<compile_context>
chip_gen: v6e
topology: v6e:2x2x1
jax: 0.10.0
libtpu: 0.0.40
codegen_flags: <defaults>
</compile_context>

<pallas_src>
import math
import functools

import jax
import jax.numpy as jnp
from jax import lax
from jax.experimental import pallas as pl
from jax.experimental.pallas import tpu as pltpu

LN_EPS = 1e-5  # torch.nn.LayerNorm default


def _layernorm_cols(x, g, b):
    # x: (D, M) with the feature axis on dim 0; g, b: (D, 1)
    mu = jnp.mean(x, axis=0, keepdims=True)
    var = jnp.mean((x - mu) ** 2, axis=0, keepdims=True)
    return (x - mu) * lax.rsqrt(var + LN_EPS) * g + b


def _gelu_tanh(x):
    # matches the custom GELU module (tanh approximation), kept in f32
    return 0.5 * x * (1.0 + jnp.tanh(math.sqrt(2.0 / math.pi) * (x + 0.044715 * x ** 3)))


def _transformer_kernel(*refs, heads, dim_head, self_attn, matmul_dtype, bt, n, nk):
    if self_attn:
        (x_ref, wq_ref, wkv_ref, wo_ref, bo_ref,
         ln1g_ref, ln1b_ref, ln2g_ref, ln2b_ref,
         w1_ref, b1_ref, w2_ref, b2_ref,
         o_ref, x_acc) = refs
        xkv_ref = None
        xkv_acc = None
    else:
        (x_ref, xkv_ref, wq_ref, wkv_ref, wo_ref, bo_ref,
         ln1g_ref, ln1b_ref, ln2g_ref, ln2b_ref,
         w1_ref, b1_ref, w2_ref, b2_ref,
         o_ref, x_acc, xkv_acc) = refs

    layer = pl.program_id(1)
    n_layers = pl.num_programs(1)
    inner = heads * dim_head
    md = matmul_dtype

    # Load + transpose the batch block into the resident accumulator once.
    @pl.when(layer == 0)
    def _init():
        for b in range(bt):
            x_acc[:, b * n:(b + 1) * n] = x_ref[b].astype(jnp.float32).T
        if not self_attn:
            for b in range(bt):
                xkv_acc[:, b * nk:(b + 1) * nk] = xkv_ref[b].astype(jnp.float32).T

    x = x_acc[...]                                        # (D, M) f32, M = bt*N
    g1, be1 = ln1g_ref[0], ln1b_ref[0]                    # (D, 1)

    # ---------- Residual(PreNorm(Attention)) ----------
    xn = _layernorm_cols(x, g1, be1)
    xn_md = xn.astype(md)
    if self_attn:
        xkvn_md = xn_md
    else:
        xkvn_md = _layernorm_cols(xkv_acc[...], g1, be1).astype(md)

    # Transposed projections: canonical (out, in) @ (in, tokens) MXU matmuls.
    # Softmax scale is already folded into wq.
    q_t = jnp.dot(wq_ref[0], xn_md, preferred_element_type=jnp.float32)      # (inner, M)
    kv_t = jnp.dot(wkv_ref[0], xkvn_md, preferred_element_type=jnp.float32)  # (2*inner, Mk)

    # Attention core is per batch item (no cross-item mixing).
    ctx_parts = []
    for b in range(bt):
        q_b = q_t[:, b * n:(b + 1) * n]                    # (inner, N)
        kv_b = kv_t[:, b * nk:(b + 1) * nk]                # (2*inner, Nk)
        qh = jnp.swapaxes(q_b.reshape(heads, dim_head, n), 1, 2)       # (H, N, Dh)
        kh = kv_b[:inner].reshape(heads, dim_head, nk)                 # (H, Dh, Nk)
        vh = kv_b[inner:].reshape(heads, dim_head, nk)                 # (H, Dh, Nk)

        dots = lax.dot_general(qh.astype(md), kh.astype(md),
                               (((2,), (1,)), ((0,), (0,))),
                               preferred_element_type=jnp.float32)     # (H, N, Nk)
        dots = dots - jnp.max(dots, axis=-1, keepdims=True)
        e = jnp.exp(dots)
        attn = e * pl.reciprocal(jnp.sum(e, axis=-1, keepdims=True), approx=True)

        # (H,Dh,Nk) x (H,N,Nk) contracting Nk (rhs contracts last) -> (H,Dh,N)
        ctx_t = lax.dot_general(vh.astype(md), attn.astype(md),
                                (((2,), (2,)), ((0,), (0,))),
                                preferred_element_type=jnp.float32)
        ctx_parts.append(ctx_t.reshape(inner, n))          # free leading merge

    ctx_all = ctx_parts[0] if bt == 1 else jnp.concatenate(ctx_parts, axis=1)  # (inner, M)

    # Fused output projection: single matmul with K = inner.
    attn_out = jnp.dot(wo_ref[0], ctx_all.astype(md),
                       preferred_element_type=jnp.float32) + bo_ref[0]  # (D, M)
    x = x + attn_out

    # ---------- Residual(PreNorm(FeedForward)) ----------
    xn2 = _layernorm_cols(x, ln2g_ref[0], ln2b_ref[0]).astype(md)
    h1 = jnp.dot(w1_ref[0], xn2, preferred_element_type=jnp.float32) + b1_ref[0]  # (mlp, M)
    h1 = _gelu_tanh(h1)
    h2 = jnp.dot(w2_ref[0], h1.astype(md), preferred_element_type=jnp.float32) + b2_ref[0]
    x = x + h2

    x_acc[...] = x

    @pl.when(layer == n_layers - 1)
    def _finish():
        for b in range(bt):
            o_ref[b] = x[:, b * n:(b + 1) * n].T.astype(o_ref.dtype)

    # TODO(synk): for long sequences / large mlp_dim on v7x (64 MiB VMEM), tile N
    # and stream the softmax over Nk flash-style and tile the FFN over mlp.


def prepare_transformer_params(raw, *, dim_head, matmul_dtype=jnp.bfloat16):
    """One-time prep: fold softmax scale into wq, cast matmul weights to the
    MXU operand dtype, reshape LayerNorm params / biases to column vectors.
    Raw weights use the PyTorch nn.Linear layout (out_features, in_features)."""
    md = matmul_dtype
    f32 = jnp.float32
    scale = dim_head ** (-0.5)
    col = lambda a: a.astype(f32).reshape(a.shape[0], a.shape[1], 1)
    return dict(
        wq=(raw["wq"] * scale).astype(md),   # (L, inner, D), scale folded
        wkv=raw["wkv"].astype(md),           # (L, 2*inner, D)
        wo=raw["wo"].astype(md),             # (L, D, inner)
        bo=col(raw["bo"]),                   # (L, D, 1)
        ln1_g=col(raw["ln1_g"]), ln1_b=col(raw["ln1_b"]),
        ln2_g=col(raw["ln2_g"]), ln2_b=col(raw["ln2_b"]),
        w1=raw["w1"].astype(md),             # (L, mlp, D)
        b1=col(raw["b1"]),                   # (L, mlp, 1)
        w2=raw["w2"].astype(md),             # (L, D, mlp)
        b2=col(raw["b2"]),                   # (L, D, 1)
    )


def transformer_forward(x, params, *, heads, dim_head, x2=None, batch_block=None):
    """Full Transformer.forward in a single pallas_call.  x: (B, N, D)."""
    B, N, D = x.shape
    self_attn = x2 is None
    Nk = N if self_attn else x2.shape[1]
    depth, inner, _ = params["wq"].shape
    mlp = params["w1"].shape[1]

    # Batch blocking: reuse each per-layer weight DMA across `bt` batch items.
    max_bt = batch_block if batch_block is not None else min(B, 4)
    bt = 1
    for c in range(1, max_bt + 1):
        if B % c == 0:
            bt = c
    M = bt * N

    keys = ("wq", "wkv", "wo", "bo", "ln1_g", "ln1_b", "ln2_g", "ln2_b",
            "w1", "b1", "w2", "b2")
    weights = [params[k] for k in keys]
    w_specs = [pl.BlockSpec((1,) + w.shape[1:], lambda bb, l: (l, 0, 0))
               for w in weights]

    in_arrays = [x] if self_attn else [x, x2]
    io_specs = [pl.BlockSpec((bt, N, D), lambda bb, l: (bb, 0, 0))]
    if not self_attn:
        io_specs.append(pl.BlockSpec((bt, Nk, D), lambda bb, l: (bb, 0, 0)))

    scratch = [pltpu.VMEM((D, bt * N), jnp.float32)]
    if not self_attn:
        scratch.append(pltpu.VMEM((D, bt * Nk), jnp.float32))

    # Scoped-VMEM budget: double-buffered weight blocks + I/O blocks + resident
    # activation + in-kernel temporaries, with headroom.
    wblock = sum(math.prod(w.shape[1:]) * w.dtype.itemsize for w in weights)
    io_b = (M * D + (0 if self_attn else bt * Nk * D) + M * D) * x.dtype.itemsize
    scr_b = 4 * (D * M + (0 if self_attn else D * bt * Nk))
    tmp_b = 4 * (6 * D * M + 2 * inner * M + 2 * inner * bt * Nk
                 + 3 * bt * heads * N * Nk + 2 * mlp * M)
    vmem_limit = int(min(100 * 1024 * 1024,
                         max(32 * 1024 * 1024,
                             2 * wblock + 2 * io_b + scr_b + tmp_b + (4 << 20))))

    kernel = functools.partial(
        _transformer_kernel,
        heads=heads, dim_head=dim_head, self_attn=self_attn,
        matmul_dtype=params["wq"].dtype, bt=bt, n=N, nk=Nk)

    return pl.pallas_call(
        kernel,
        out_shape=jax.ShapeDtypeStruct((B, N, D), x.dtype),
        grid_spec=pltpu.PrefetchScalarGridSpec(
            num_scalar_prefetch=0,
            grid=(B // bt, depth),                 # carried (depth) axis last
            in_specs=io_specs + w_specs,
            out_specs=pl.BlockSpec((bt, N, D), lambda bb, l: (bb, 0, 0)),
            scratch_shapes=scratch),
        compiler_params=pltpu.CompilerParams(
            dimension_semantics=("parallel", "arbitrary"),
            vmem_limit_bytes=vmem_limit),
    )(*in_arrays, *weights)


# ---------------- parameter init (deterministic, PyTorch weight layout) ----------------
def init_transformer_params(key, dim, depth, heads, dim_head, mlp_dim):
    inner = heads * dim_head
    ks = jax.random.split(key, 12)
    f32 = jnp.float32
    nrm = lambda k, s: jax.random.normal(k, s, f32)
    return dict(
        wq=0.05 * nrm(ks[0], (depth, inner, dim)),
        wkv=0.05 * nrm(ks[1], (depth, 2 * inner, dim)),
        wo=0.05 * nrm(ks[2], (depth, dim, inner)),
        bo=0.01 * nrm(ks[3], (depth, dim)),
        ln1_g=1.0 + 0.1 * nrm(ks[4], (depth, dim)),
        ln1_b=0.05 * nrm(ks[5], (depth, dim)),
        ln2_g=1.0 + 0.1 * nrm(ks[6], (depth, dim)),
        ln2_b=0.05 * nrm(ks[7], (depth, dim)),
        w1=0.05 * nrm(ks[8], (depth, mlp_dim, dim)),
        b1=0.01 * nrm(ks[9], (depth, mlp_dim)),
        w2=0.05 * nrm(ks[10], (depth, dim, mlp_dim)),
        b2=0.01 * nrm(ks[11], (depth, dim)),
    )


# ---------------- pure-JAX reference (faithful transcription of the module) ----------------
def _ref_forward(x, p, heads, dim_head, x2=None):
    inner = heads * dim_head
    scale = dim_head ** (-0.5)
    depth = p["wq"].shape[0]

    def ln(t, g, b):
        mu = jnp.mean(t, -1, keepdims=True)
        var = jnp.mean((t - mu) ** 2, -1, keepdims=True)
        return (t - mu) / jnp.sqrt(var + LN_EPS) * g + b

    for l in range(depth):
        src = x if x2 is None else x2
        xn = ln(x, p["ln1_g"][l], p["ln1_b"][l])
        srcn = ln(src, p["ln1_g"][l], p["ln1_b"][l])
        q = xn @ p["wq"][l].T
        kv = srcn @ p["wkv"][l].T
        k, v = kv[..., :inner], kv[..., inner:]
        B, N, _ = q.shape
        Nk = k.shape[1]
        qh = q.reshape(B, N, heads, dim_head).transpose(0, 2, 1, 3)
        kh = k.reshape(B, Nk, heads, dim_head).transpose(0, 2, 1, 3)
        vh = v.reshape(B, Nk, heads, dim_head).transpose(0, 2, 1, 3)
        dots = jnp.einsum("bhid,bhjd->bhij", qh, kh) * scale
        attn = jax.nn.softmax(dots, axis=-1)
        out = jnp.einsum("bhij,bhjd->bhid", attn, vh)
        out = out.transpose(0, 2, 1, 3).reshape(B, N, inner)
        out = out @ p["wo"][l].T + p["bo"][l]
        x = x + out
        xn2 = ln(x, p["ln2_g"][l], p["ln2_b"][l])
        h1 = xn2 @ p["w1"][l].T + p["b1"][l]
        h1 = 0.5 * h1 * (1 + jnp.tanh(math.sqrt(2 / math.pi) * (h1 + 0.044715 * h1 ** 3)))
        x = x + (h1 @ p["w2"][l].T + p["b2"][l])
    return x


if __name__ == "__main__":
    # Small shapes consistent with the module: x is (batch, seq, dim)
    B, N, DIM = 2, 8, 32
    DEPTH, HEADS, DIM_HEAD, MLP_DIM = 2, 4, 8, 64

    key = jax.random.PRNGKey(0)
    kx, kx2, kp = jax.random.split(key, 3)
    x = jax.random.normal(kx, (B, N, DIM), jnp.float32)
    x2 = jax.random.normal(kx2, (B, N, DIM), jnp.float32)
    raw = init_transformer_params(kp, DIM, DEPTH, HEADS, DIM_HEAD, MLP_DIM)

    ref = _ref_forward(x, raw, HEADS, DIM_HEAD)
    ref_x2 = _ref_forward(x, raw, HEADS, DIM_HEAD, x2=x2)

    # f32 MXU-operand path: tight checks (self- and cross-attention)
    p32 = prepare_transformer_params(raw, dim_head=DIM_HEAD, matmul_dtype=jnp.float32)
    out = jax.block_until_ready(
        transformer_forward(x, p32, heads=HEADS, dim_head=DIM_HEAD))
    assert out.shape == (B, N, DIM)
    assert jnp.max(jnp.abs(out - ref)) < 5e-3, "self-attn f32 mismatch vs reference"

    out_x2 = jax.block_until_ready(
        transformer_forward(x, p32, heads=HEADS, dim_head=DIM_HEAD, x2=x2))
    assert jnp.max(jnp.abs(out_x2 - ref_x2)) < 5e-3, "cross-attn f32 mismatch vs reference"

    # bf16 MXU-operand default path (right choice on v5e/v6e/v7x): looser sanity check
    pbf = prepare_transformer_params(raw, dim_head=DIM_HEAD)  # bf16 default
    out_bf = jax.block_until_ready(
        transformer_forward(x, pbf, heads=HEADS, dim_head=DIM_HEAD))
    assert jnp.max(jnp.abs(out_bf - ref)) < 5e-2, "bf16 path sanity check failed"

    print("KERNEL_OK")
</pallas_src>

<mosaic_0001>
module attributes {stable_mosaic.version = 11 : i64} {
  func.func @_transformer_kernel(%arg0: i32, %arg1: i32, %arg2: memref<2x8x32xf32, #tpu.memory_space<vmem>>, %arg3: memref<1x32x32xf32, #tpu.memory_space<vmem>>, %arg4: memref<1x64x32xf32, #tpu.memory_space<vmem>>, %arg5: memref<1x32x32xf32, #tpu.memory_space<vmem>>, %arg6: memref<1x32x1xf32, #tpu.memory_space<vmem>>, %arg7: memref<1x32x1xf32, #tpu.memory_space<vmem>>, %arg8: memref<1x32x1xf32, #tpu.memory_space<vmem>>, %arg9: memref<1x32x1xf32, #tpu.memory_space<vmem>>, %arg10: memref<1x32x1xf32, #tpu.memory_space<vmem>>, %arg11: memref<1x64x32xf32, #tpu.memory_space<vmem>>, %arg12: memref<1x64x1xf32, #tpu.memory_space<vmem>>, %arg13: memref<1x32x64xf32, #tpu.memory_space<vmem>>, %arg14: memref<1x32x1xf32, #tpu.memory_space<vmem>>, %arg15: memref<2x8x32xf32, #tpu.memory_space<vmem>>, %arg16: memref<32x16xf32, #tpu.memory_space<vmem>>) attributes {dimension_semantics = [#tpu.dimension_semantics<parallel>, #tpu.dimension_semantics<arbitrary>], iteration_bounds = array<i64: 1, 2>, scalar_prefetch = 0 : i64, scratch_operands = 1 : i64, tpu.core_type = #tpu.core_type<tc>, window_params = [{transform_indices = @transform_0, window_bounds = array<i64: 2, 8, 32>}, {transform_indices = @transform_1, window_bounds = array<i64: 1, 32, 32>}, {transform_indices = @transform_2, window_bounds = array<i64: 1, 64, 32>}, {transform_indices = @transform_3, window_bounds = array<i64: 1, 32, 32>}, {transform_indices = @transform_4, window_bounds = array<i64: 1, 32, 1>}, {transform_indices = @transform_5, window_bounds = array<i64: 1, 32, 1>}, {transform_indices = @transform_6, window_bounds = array<i64: 1, 32, 1>}, {transform_indices = @transform_7, window_bounds = array<i64: 1, 32, 1>}, {transform_indices = @transform_8, window_bounds = array<i64: 1, 32, 1>}, {transform_indices = @transform_9, window_bounds = array<i64: 1, 64, 32>}, {transform_indices = @transform_10, window_bounds = array<i64: 1, 64, 1>}, {transform_indices = @transform_11, window_bounds = array<i64: 1, 32, 64>}, {transform_indices = @transform_12, window_bounds = array<i64: 1, 32, 1>}, {transform_indices = @transform_13, window_bounds = array<i64: 2, 8, 32>}]} {
    %c0_i32 = arith.constant 0 : i32
    %0 = arith.cmpi eq, %arg1, %c0_i32 : i32
    %1 = arith.extui %0 : i1 to i32
    %c0_i32_0 = arith.constant 0 : i32
    %2 = arith.cmpi ne, %1, %c0_i32_0 : i32
    scf.if %2 {
      %c0_67 = arith.constant 0 : index
      %c0_68 = arith.constant 0 : index
      %c0_69 = arith.constant 0 : index
      %145 = vector.load %arg2[%c0_67, %c0_68, %c0_69] : memref<2x8x32xf32, #tpu.memory_space<vmem>>, vector<1x8x32xf32>
      %146 = vector.shape_cast %145 : vector<1x8x32xf32> to vector<8x32xf32>
      %147 = tpu.transpose %146, [1, 0] : vector<8x32xf32> -> vector<32x8xf32>
      %c0_70 = arith.constant 0 : index
      %c0_71 = arith.constant 0 : index
      %148 = vector.load %arg16[%c0_70, %c0_71] : memref<32x16xf32, #tpu.memory_space<vmem>>, vector<32x8xf32>
      tpu.vector_store %arg16[%c0_70, %c0_71], %147 {strides = array<i32>} : memref<32x16xf32, #tpu.memory_space<vmem>>, vector<32x8xf32>,
      %c1 = arith.constant 1 : index
      %c0_72 = arith.constant 0 : index
      %c0_73 = arith.constant 0 : index
      %149 = vector.load %arg2[%c1, %c0_72, %c0_73] : memref<2x8x32xf32, #tpu.memory_space<vmem>>, vector<1x8x32xf32>
      %150 = vector.shape_cast %149 : vector<1x8x32xf32> to vector<8x32xf32>
      %151 = tpu.transpose %150, [1, 0] : vector<8x32xf32> -> vector<32x8xf32>
      %c0_74 = arith.constant 0 : index
      %c8 = arith.constant 8 : index
      %152 = vector.load %arg16[%c0_74, %c8] : memref<32x16xf32, #tpu.memory_space<vmem>>, vector<32x8xf32>
      tpu.vector_store %arg16[%c0_74, %c8], %151 {strides = array<i32>} : memref<32x16xf32, #tpu.memory_space<vmem>>, vector<32x8xf32>,
    } else {
    }
    %c0 = arith.constant 0 : index
    %c0_1 = arith.constant 0 : index
    %3 = vector.load %arg16[%c0, %c0_1] : memref<32x16xf32, #tpu.memory_space<vmem>>, vector<32x16xf32>
    %c0_2 = arith.constant 0 : index
    %c0_3 = arith.constant 0 : index
    %c0_4 = arith.constant 0 : index
    %4 = vector.load %arg7[%c0_2, %c0_3, %c0_4] : memref<1x32x1xf32, #tpu.memory_space<vmem>>, vector<1x32x1xf32>
    %5 = vector.shape_cast %4 : vector<1x32x1xf32> to vector<32x1xf32>
    %c0_5 = arith.constant 0 : index
    %c0_6 = arith.constant 0 : index
    %c0_7 = arith.constant 0 : index
    %6 = vector.load %arg8[%c0_5, %c0_6, %c0_7] : memref<1x32x1xf32, #tpu.memory_space<vmem>>, vector<1x32x1xf32>
    %7 = vector.shape_cast %6 : vector<1x32x1xf32> to vector<32x1xf32>
    %cst = arith.constant dense<0.000000e+00> : vector<16xf32>
    %8 = vector.multi_reduction <add>, %3, %cst [0] : vector<32x16xf32> to vector<16xf32>
    %9 = vector.shape_cast %8 : vector<16xf32> to vector<1x16xf32>
    %cst_8 = arith.constant 3.200000e+01 : f32
    %10 = vector.broadcast %cst_8 : f32 to vector<1x16xf32>
    %11 = arith.divf %9, %10 : vector<1x16xf32>
    %12 = vector.broadcast %11 : vector<1x16xf32> to vector<32x16xf32>
    %13 = arith.subf %3, %12 : vector<32x16xf32>
    %14 = arith.mulf %13, %13 : vector<32x16xf32>
    %cst_9 = arith.constant dense<0.000000e+00> : vector<16xf32>
    %15 = vector.multi_reduction <add>, %14, %cst_9 [0] : vector<32x16xf32> to vector<16xf32>
    %16 = vector.shape_cast %15 : vector<16xf32> to vector<1x16xf32>
    %cst_10 = arith.constant 3.200000e+01 : f32
    %17 = vector.broadcast %cst_10 : f32 to vector<1x16xf32>
    %18 = arith.divf %16, %17 : vector<1x16xf32>
    %19 = vector.broadcast %11 : vector<1x16xf32> to vector<32x16xf32>
    %20 = arith.subf %3, %19 : vector<32x16xf32>
    %cst_11 = arith.constant 9.99999974E-6 : f32
    %21 = vector.broadcast %cst_11 : f32 to vector<1x16xf32>
    %22 = arith.addf %18, %21 : vector<1x16xf32>
    %23 = math.rsqrt %22 : vector<1x16xf32>
    %24 = vector.broadcast %23 : vector<1x16xf32> to vector<32x16xf32>
    %25 = arith.mulf %20, %24 : vector<32x16xf32>
    %26 = vector.broadcast %5 : vector<32x1xf32> to vector<32x16xf32>
    %27 = arith.mulf %25, %26 : vector<32x16xf32>
    %28 = vector.broadcast %7 : vector<32x1xf32> to vector<32x16xf32>
    %29 = arith.addf %27, %28 : vector<32x16xf32>
    %c0_12 = arith.constant 0 : index
    %c0_13 = arith.constant 0 : index
    %c0_14 = arith.constant 0 : index
    %30 = vector.load %arg3[%c0_12, %c0_13, %c0_14] : memref<1x32x32xf32, #tpu.memory_space<vmem>>, vector<1x32x32xf32>
    %31 = vector.shape_cast %30 : vector<1x32x32xf32> to vector<32x32xf32>
    %cst_15 = arith.constant dense<0.000000e+00> : vector<32x16xf32>
    %32 = tpu.matmul %31, %29, %cst_15 {dimension_numbers = #tpu.dot_dimension_numbers<[1], [0], [0], [1], [0, 0, 1, 1], [], []>} : vector<32x32xf32>, vector<32x16xf32>, vector<32x16xf32> -> vector<32x16xf32>
    %c0_16 = arith.constant 0 : index
    %c0_17 = arith.constant 0 : index
    %c0_18 = arith.constant 0 : index
    %33 = vector.load %arg4[%c0_16, %c0_17, %c0_18] : memref<1x64x32xf32, #tpu.memory_space<vmem>>, vector<1x64x32xf32>
    %34 = vector.shape_cast %33 : vector<1x64x32xf32> to vector<64x32xf32>
    %cst_19 = arith.constant dense<0.000000e+00> : vector<64x16xf32>
    %35 = tpu.matmul %34, %29, %cst_19 {dimension_numbers = #tpu.dot_dimension_numbers<[1], [0], [0], [1], [0, 0, 1, 1], [], []>} : vector<64x32xf32>, vector<32x16xf32>, vector<64x16xf32> -> vector<64x16xf32>
    %36 = vector.extract_strided_slice %32 {offsets = [0, 0], sizes = [32, 8], strides = [1, 1]} : vector<32x16xf32> to vector<32x8xf32>
    %37 = vector.extract_strided_slice %35 {offsets = [0, 0], sizes = [64, 8], strides = [1, 1]} : vector<64x16xf32> to vector<64x8xf32>
    %38 = vector.shape_cast %36 : vector<32x8xf32> to vector<4x8x8xf32>
    %39 = tpu.transpose %38, [0, 2, 1] : vector<4x8x8xf32> -> vector<4x8x8xf32>
    %40 = vector.extract_strided_slice %37 {offsets = [0, 0], sizes = [32, 8], strides = [1, 1]} : vector<64x8xf32> to vector<32x8xf32>
    %41 = vector.shape_cast %40 : vector<32x8xf32> to vector<4x8x8xf32>
    %42 = vector.extract_strided_slice %37 {offsets = [32, 0], sizes = [32, 8], strides = [1, 1]} : vector<64x8xf32> to vector<32x8xf32>
    %43 = vector.shape_cast %42 : vector<32x8xf32> to vector<4x8x8xf32>
    %cst_20 = arith.constant dense<0.000000e+00> : vector<4x8x8xf32>
    %44 = tpu.matmul %39, %41, %cst_20 {dimension_numbers = #tpu.dot_dimension_numbers<[2], [1], [1], [2], [0, 0, 0, 1, 1, 2], [0], [0]>} : vector<4x8x8xf32>, vector<4x8x8xf32>, vector<4x8x8xf32> -> vector<4x8x8xf32>
    %cst_21 = arith.constant dense<0xFF800000> : vector<4x8xf32>
    %45 = vector.multi_reduction <maximumf>, %44, %cst_21 [2] : vector<4x8x8xf32> to vector<4x8xf32>
    %46 = vector.shape_cast %45 : vector<4x8xf32> to vector<4x8x1xf32>
    %47 = vector.broadcast %46 : vector<4x8x1xf32> to vector<4x8x8xf32>
    %48 = arith.subf %44, %47 : vector<4x8x8xf32>
    %49 = math.exp %48 : vector<4x8x8xf32>
    %cst_22 = arith.constant dense<0.000000e+00> : vector<4x8xf32>
    %50 = vector.multi_reduction <add>, %49, %cst_22 [2] : vector<4x8x8xf32> to vector<4x8xf32>
    %51 = vector.shape_cast %50 : vector<4x8xf32> to vector<4x8x1xf32>
    %52 = tpu.reciprocal %51 {approx = true} : vector<4x8x1xf32> -> vector<4x8x1xf32>
    %53 = vector.broadcast %52 : vector<4x8x1xf32> to vector<4x8x8xf32>
    %54 = arith.mulf %49, %53 : vector<4x8x8xf32>
    %cst_23 = arith.constant dense<0.000000e+00> : vector<4x8x8xf32>
    %55 = tpu.matmul %43, %54, %cst_23 {dimension_numbers = #tpu.dot_dimension_numbers<[2], [2], [1], [1], [0, 0, 0, 1, 1, 1], [0], [0]>} : vector<4x8x8xf32>, vector<4x8x8xf32>, vector<4x8x8xf32> -> vector<4x8x8xf32>
    %56 = vector.shape_cast %55 : vector<4x8x8xf32> to vector<32x8xf32>
    %57 = vector.extract_strided_slice %32 {offsets = [0, 8], sizes = [32, 8], strides = [1, 1]} : vector<32x16xf32> to vector<32x8xf32>
    %58 = vector.extract_strided_slice %35 {offsets = [0, 8], sizes = [64, 8], strides = [1, 1]} : vector<64x16xf32> to vector<64x8xf32>
    %59 = vector.shape_cast %57 : vector<32x8xf32> to vector<4x8x8xf32>
    %60 = tpu.transpose %59, [0, 2, 1] : vector<4x8x8xf32> -> vector<4x8x8xf32>
    %61 = vector.extract_strided_slice %58 {offsets = [0, 0], sizes = [32, 8], strides = [1, 1]} : vector<64x8xf32> to vector<32x8xf32>
    %62 = vector.shape_cast %61 : vector<32x8xf32> to vector<4x8x8xf32>
    %63 = vector.extract_strided_slice %58 {offsets = [32, 0], sizes = [32, 8], strides = [1, 1]} : vector<64x8xf32> to vector<32x8xf32>
    %64 = vector.shape_cast %63 : vector<32x8xf32> to vector<4x8x8xf32>
    %cst_24 = arith.constant dense<0.000000e+00> : vector<4x8x8xf32>
    %65 = tpu.matmul %60, %62, %cst_24 {dimension_numbers = #tpu.dot_dimension_numbers<[2], [1], [1], [2], [0, 0, 0, 1, 1, 2], [0], [0]>} : vector<4x8x8xf32>, vector<4x8x8xf32>, vector<4x8x8xf32> -> vector<4x8x8xf32>
    %cst_25 = arith.constant dense<0xFF800000> : vector<4x8xf32>
    %66 = vector.multi_reduction <maximumf>, %65, %cst_25 [2] : vector<4x8x8xf32> to vector<4x8xf32>
    %67 = vector.shape_cast %66 : vector<4x8xf32> to vector<4x8x1xf32>
    %68 = vector.broadcast %67 : vector<4x8x1xf32> to vector<4x8x8xf32>
    %69 = arith.subf %65, %68 : vector<4x8x8xf32>
    %70 = math.exp %69 : vector<4x8x8xf32>
    %cst_26 = arith.constant dense<0.000000e+00> : vector<4x8xf32>
    %71 = vector.multi_reduction <add>, %70, %cst_26 [2] : vector<4x8x8xf32> to vector<4x8xf32>
    %72 = vector.shape_cast %71 : vector<4x8xf32> to vector<4x8x1xf32>
    %73 = tpu.reciprocal %72 {approx = true} : vector<4x8x1xf32> -> vector<4x8x1xf32>
    %74 = vector.broadcast %73 : vector<4x8x1xf32> to vector<4x8x8xf32>
    %75 = arith.mulf %70, %74 : vector<4x8x8xf32>
    %cst_27 = arith.constant dense<0.000000e+00> : vector<4x8x8xf32>
    %76 = tpu.matmul %64, %75, %cst_27 {dimension_numbers = #tpu.dot_dimension_numbers<[2], [2], [1], [1], [0, 0, 0, 1, 1, 1], [0], [0]>} : vector<4x8x8xf32>, vector<4x8x8xf32>, vector<4x8x8xf32> -> vector<4x8x8xf32>
    %77 = vector.shape_cast %76 : vector<4x8x8xf32> to vector<32x8xf32>
    %78 = tpu.concatenate %56, %77 in 1 : vector<32x8xf32>, vector<32x8xf32> -> vector<32x16xf32>
    %c0_28 = arith.constant 0 : index
    %c0_29 = arith.constant 0 : index
    %c0_30 = arith.constant 0 : index
    %79 = vector.load %arg5[%c0_28, %c0_29, %c0_30] : memref<1x32x32xf32, #tpu.memory_space<vmem>>, vector<1x32x32xf32>
    %80 = vector.shape_cast %79 : vector<1x32x32xf32> to vector<32x32xf32>
    %cst_31 = arith.constant dense<0.000000e+00> : vector<32x16xf32>
    %81 = tpu.matmul %80, %78, %cst_31 {dimension_numbers = #tpu.dot_dimension_numbers<[1], [0], [0], [1], [0, 0, 1, 1], [], []>} : vector<32x32xf32>, vector<32x16xf32>, vector<32x16xf32> -> vector<32x16xf32>
    %c0_32 = arith.constant 0 : index
    %c0_33 = arith.constant 0 : index
    %c0_34 = arith.constant 0 : index
    %82 = vector.load %arg6[%c0_32, %c0_33, %c0_34] : memref<1x32x1xf32, #tpu.memory_space<vmem>>, vector<1x32x1xf32>
    %83 = vector.shape_cast %82 : vector<1x32x1xf32> to vector<32x1xf32>
    %84 = vector.broadcast %83 : vector<32x1xf32> to vector<32x16xf32>
    %85 = arith.addf %81, %84 : vector<32x16xf32>
    %86 = arith.addf %3, %85 : vector<32x16xf32>
    %c0_35 = arith.constant 0 : index
    %c0_36 = arith.constant 0 : index
    %c0_37 = arith.constant 0 : index
    %87 = vector.load %arg9[%c0_35, %c0_36, %c0_37] : memref<1x32x1xf32, #tpu.memory_space<vmem>>, vector<1x32x1xf32>
    %88 = vector.shape_cast %87 : vector<1x32x1xf32> to vector<32x1xf32>
    %c0_38 = arith.constant 0 : index
    %c0_39 = arith.constant 0 : index
    %c0_40 = arith.constant 0 : index
    %89 = vector.load %arg10[%c0_38, %c0_39, %c0_40] : memref<1x32x1xf32, #tpu.memory_space<vmem>>, vector<1x32x1xf32>
    %90 = vector.shape_cast %89 : vector<1x32x1xf32> to vector<32x1xf32>
    %cst_41 = arith.constant dense<0.000000e+00> : vector<16xf32>
    %91 = vector.multi_reduction <add>, %86, %cst_41 [0] : vector<32x16xf32> to vector<16xf32>
    %92 = vector.shape_cast %91 : vector<16xf32> to vector<1x16xf32>
    %cst_42 = arith.constant 3.200000e+01 : f32
    %93 = vector.broadcast %cst_42 : f32 to vector<1x16xf32>
    %94 = arith.divf %92, %93 : vector<1x16xf32>
    %95 = vector.broadcast %94 : vector<1x16xf32> to vector<32x16xf32>
    %96 = arith.subf %86, %95 : vector<32x16xf32>
    %97 = arith.mulf %96, %96 : vector<32x16xf32>
    %cst_43 = arith.constant dense<0.000000e+00> : vector<16xf32>
    %98 = vector.multi_reduction <add>, %97, %cst_43 [0] : vector<32x16xf32> to vector<16xf32>
    %99 = vector.shape_cast %98 : vector<16xf32> to vector<1x16xf32>
    %cst_44 = arith.constant 3.200000e+01 : f32
    %100 = vector.broadcast %cst_44 : f32 to vector<1x16xf32>
    %101 = arith.divf %99, %100 : vector<1x16xf32>
    %102 = vector.broadcast %94 : vector<1x16xf32> to vector<32x16xf32>
    %103 = arith.subf %86, %102 : vector<32x16xf32>
    %cst_45 = arith.constant 9.99999974E-6 : f32
    %104 = vector.broadcast %cst_45 : f32 to vector<1x16xf32>
    %105 = arith.addf %101, %104 : vector<1x16xf32>
    %106 = math.rsqrt %105 : vector<1x16xf32>
    %107 = vector.broadcast %106 : vector<1x16xf32> to vector<32x16xf32>
    %108 = arith.mulf %103, %107 : vector<32x16xf32>
    %109 = vector.broadcast %88 : vector<32x1xf32> to vector<32x16xf32>
    %110 = arith.mulf %108, %109 : vector<32x16xf32>
    %111 = vector.broadcast %90 : vector<32x1xf32> to vector<32x16xf32>
    %112 = arith.addf %110, %111 : vector<32x16xf32>
    %c0_46 = arith.constant 0 : index
    %c0_47 = arith.constant 0 : index
    %c0_48 = arith.constant 0 : index
    %113 = vector.load %arg11[%c0_46, %c0_47, %c0_48] : memref<1x64x32xf32, #tpu.memory_space<vmem>>, vector<1x64x32xf32>
    %114 = vector.shape_cast %113 : vector<1x64x32xf32> to vector<64x32xf32>
    %cst_49 = arith.constant dense<0.000000e+00> : vector<64x16xf32>
    %115 = tpu.matmul %114, %112, %cst_49 {dimension_numbers = #tpu.dot_dimension_numbers<[1], [0], [0], [1], [0, 0, 1, 1], [], []>} : vector<64x32xf32>, vector<32x16xf32>, vector<64x16xf32> -> vector<64x16xf32>
    %c0_50 = arith.constant 0 : index
    %c0_51 = arith.constant 0 : index
    %c0_52 = arith.constant 0 : index
    %116 = vector.load %arg12[%c0_50, %c0_51, %c0_52] : memref<1x64x1xf32, #tpu.memory_space<vmem>>, vector<1x64x1xf32>
    %117 = vector.shape_cast %116 : vector<1x64x1xf32> to vector<64x1xf32>
    %118 = vector.broadcast %117 : vector<64x1xf32> to vector<64x16xf32>
    %119 = arith.addf %115, %118 : vector<64x16xf32>
    %cst_53 = arith.constant 5.000000e-01 : f32
    %120 = vector.broadcast %cst_53 : f32 to vector<64x16xf32>
    %121 = arith.mulf %120, %119 : vector<64x16xf32>
    %122 = arith.mulf %119, %119 : vector<64x16xf32>
    %123 = arith.mulf %119, %122 : vector<64x16xf32>
    %cst_54 = arith.constant 4.471500e-02 : f32
    %124 = vector.broadcast %cst_54 : f32 to vector<64x16xf32>
    %125 = arith.mulf %124, %123 : vector<64x16xf32>
    %126 = arith.addf %119, %125 : vector<64x16xf32>
    %cst_55 = arith.constant 0.797884583 : f32
    %127 = vector.broadcast %cst_55 : f32 to vector<64x16xf32>
    %128 = arith.mulf %127, %126 : vector<64x16xf32>
    %129 = math.tanh %128 : vector<64x16xf32>
    %cst_56 = arith.constant 1.000000e+00 : f32
    %130 = vector.broadcast %cst_56 : f32 to vector<64x16xf32>
    %131 = arith.addf %130, %129 : vector<64x16xf32>
    %132 = arith.mulf %121, %131 : vector<64x16xf32>
    %c0_57 = arith.constant 0 : index
    %c0_58 = arith.constant 0 : index
    %c0_59 = arith.constant 0 : index
    %133 = vector.load %arg13[%c0_57, %c0_58, %c0_59] : memref<1x32x64xf32, #tpu.memory_space<vmem>>, vector<1x32x64xf32>
    %134 = vector.shape_cast %133 : vector<1x32x64xf32> to vector<32x64xf32>
    %cst_60 = arith.constant dense<0.000000e+00> : vector<32x16xf32>
    %135 = tpu.matmul %134, %132, %cst_60 {dimension_numbers = #tpu.dot_dimension_numbers<[1], [0], [0], [1], [0, 0, 1, 1], [], []>} : vector<32x64xf32>, vector<64x16xf32>, vector<32x16xf32> -> vector<32x16xf32>
    %c0_61 = arith.constant 0 : index
    %c0_62 = arith.constant 0 : index
    %c0_63 = arith.constant 0 : index
    %136 = vector.load %arg14[%c0_61, %c0_62, %c0_63] : memref<1x32x1xf32, #tpu.memory_space<vmem>>, vector<1x32x1xf32>
    %137 = vector.shape_cast %136 : vector<1x32x1xf32> to vector<32x1xf32>
    %138 = vector.broadcast %137 : vector<32x1xf32> to vector<32x16xf32>
    %139 = arith.addf %135, %138 : vector<32x16xf32>
    %140 = arith.addf %86, %139 : vector<32x16xf32>
    %c0_64 = arith.constant 0 : index
    %c0_65 = arith.constant 0 : index
    %141 = vector.load %arg16[%c0_64, %c0_65] : memref<32x16xf32, #tpu.memory_space<vmem>>, vector<32x16xf32>
    tpu.vector_store %arg16[%c0_64, %c0_65], %140 {strides = array<i32>} : memref<32x16xf32, #tpu.memory_space<vmem>>, vector<32x16xf32>,
    %c1_i32 = arith.constant 1 : i32
    %142 = arith.cmpi eq, %arg1, %c1_i32 : i32
    %143 = arith.extui %142 : i1 to i32
    %c0_i32_66 = arith.constant 0 : i32
    %144 = arith.cmpi ne, %143, %c0_i32_66 : i32
    scf.if %144 {
      %145 = vector.extract_strided_slice %140 {offsets = [0, 0], sizes = [32, 8], strides = [1, 1]} : vector<32x16xf32> to vector<32x8xf32>
      %146 = tpu.transpose %145, [1, 0] : vector<32x8xf32> -> vector<8x32xf32>
      %c0_67 = arith.constant 0 : index
      %c0_68 = arith.constant 0 : index
      %c0_69 = arith.constant 0 : index
      %147 = vector.load %arg15[%c0_67, %c0_68, %c0_69] : memref<2x8x32xf32, #tpu.memory_space<vmem>>, vector<1x8x32xf32>
      %148 = vector.shape_cast %147 : vector<1x8x32xf32> to vector<8x32xf32>
      %149 = vector.shape_cast %146 : vector<8x32xf32> to vector<1x8x32xf32>
      tpu.vector_store %arg15[%c0_67, %c0_68, %c0_69], %149 {strides = array<i32>} : memref<2x8x32xf32, #tpu.memory_space<vmem>>, vector<1x8x32xf32>,
      %150 = vector.extract_strided_slice %140 {offsets = [0, 8], sizes = [32, 8], strides = [1, 1]} : vector<32x16xf32> to vector<32x8xf32>
      %151 = tpu.transpose %150, [1, 0] : vector<32x8xf32> -> vector<8x32xf32>
      %c1 = arith.constant 1 : index
      %c0_70 = arith.constant 0 : index
      %c0_71 = arith.constant 0 : index
      %152 = vector.load %arg15[%c1, %c0_70, %c0_71] : memref<2x8x32xf32, #tpu.memory_space<vmem>>, vector<1x8x32xf32>
      %153 = vector.shape_cast %152 : vector<1x8x32xf32> to vector<8x32xf32>
      %154 = vector.shape_cast %151 : vector<8x32xf32> to vector<1x8x32xf32>
      tpu.vector_store %arg15[%c1, %c0_70, %c0_71], %154 {strides = array<i32>} : memref<2x8x32xf32, #tpu.memory_space<vmem>>, vector<1x8x32xf32>,
    } else {
    }
    return
  }
  func.func @transform_0(%arg0: i32, %arg1: i32) -> (i32, i32, i32) {
    %c0_i32 = arith.constant 0 : i32
    %c0_i32_0 = arith.constant 0 : i32
    %c0_i32_1 = arith.constant 0 : i32
    return %arg0, %c0_i32, %c0_i32_0 : i32, i32, i32
  }
  func.func @transform_1(%arg0: i32, %arg1: i32) -> (i32, i32, i32) {
    %c0_i32 = arith.constant 0 : i32
    %c0_i32_0 = arith.constant 0 : i32
    %c0_i32_1 = arith.constant 0 : i32
    return %arg1, %c0_i32, %c0_i32_0 : i32, i32, i32
  }
  func.func @transform_2(%arg0: i32, %arg1: i32) -> (i32, i32, i32) {
    %c0_i32 = arith.constant 0 : i32
    %c0_i32_0 = arith.constant 0 : i32
    %c0_i32_1 = arith.constant 0 : i32
    return %arg1, %c0_i32, %c0_i32_0 : i32, i32, i32
  }
  func.func @transform_3(%arg0: i32, %arg1: i32) -> (i32, i32, i32) {
    %c0_i32 = arith.constant 0 : i32
    %c0_i32_0 = arith.constant 0 : i32
    %c0_i32_1 = arith.constant 0 : i32
    return %arg1, %c0_i32, %c0_i32_0 : i32, i32, i32
  }
  func.func @transform_4(%arg0: i32, %arg1: i32) -> (i32, i32, i32) {
    %c0_i32 = arith.constant 0 : i32
    %c0_i32_0 = arith.constant 0 : i32
    %c0_i32_1 = arith.constant 0 : i32
    return %arg1, %c0_i32, %c0_i32_0 : i32, i32, i32
  }
  func.func @transform_5(%arg0: i32, %arg1: i32) -> (i32, i32, i32) {
    %c0_i32 = arith.constant 0 : i32
    %c0_i32_0 = arith.constant 0 : i32
    %c0_i32_1 = arith.constant 0 : i32
    return %arg1, %c0_i32, %c0_i32_0 : i32, i32, i32
  }
  func.func @transform_6(%arg0: i32, %arg1: i32) -> (i32, i32, i32) {
    %c0_i32 = arith.constant 0 : i32
    %c0_i32_0 = arith.constant 0 : i32
    %c0_i32_1 = arith.constant 0 : i32
    return %arg1, %c0_i32, %c0_i32_0 : i32, i32, i32
  }
  func.func @transform_7(%arg0: i32, %arg1: i32) -> (i32, i32, i32) {
    %c0_i32 = arith.constant 0 : i32
    %c0_i32_0 = arith.constant 0 : i32
    %c0_i32_1 = arith.constant 0 : i32
    return %arg1, %c0_i32, %c0_i32_0 : i32, i32, i32
  }
  func.func @transform_8(%arg0: i32, %arg1: i32) -> (i32, i32, i32) {
    %c0_i32 = arith.constant 0 : i32
    %c0_i32_0 = arith.constant 0 : i32
    %c0_i32_1 = arith.constant 0 : i32
    return %arg1, %c0_i32, %c0_i32_0 : i32, i32, i32
  }
  func.func @transform_9(%arg0: i32, %arg1: i32) -> (i32, i32, i32) {
    %c0_i32 = arith.constant 0 : i32
    %c0_i32_0 = arith.constant 0 : i32
    %c0_i32_1 = arith.constant 0 : i32
    return %arg1, %c0_i32, %c0_i32_0 : i32, i32, i32
  }
  func.func @transform_10(%arg0: i32, %arg1: i32) -> (i32, i32, i32) {
    %c0_i32 = arith.constant 0 : i32
    %c0_i32_0 = arith.constant 0 : i32
    %c0_i32_1 = arith.constant 0 : i32
    return %arg1, %c0_i32, %c0_i32_0 : i32, i32, i32
  }
  func.func @transform_11(%arg0: i32, %arg1: i32) -> (i32, i32, i32) {
    %c0_i32 = arith.constant 0 : i32
    %c0_i32_0 = arith.constant 0 : i32
    %c0_i32_1 = arith.constant 0 : i32
    return %arg1, %c0_i32, %c0_i32_0 : i32, i32, i32
  }
  func.func @transform_12(%arg0: i32, %arg1: i32) -> (i32, i32, i32) {
    %c0_i32 = arith.constant 0 : i32
    %c0_i32_0 = arith.constant 0 : i32
    %c0_i32_1 = arith.constant 0 : i32
    return %arg1, %c0_i32, %c0_i32_0 : i32, i32, i32
  }
  func.func @transform_13(%arg0: i32, %arg1: i32) -> (i32, i32, i32) {
    %c0_i32 = arith.constant 0 : i32
    %c0_i32_0 = arith.constant 0 : i32
    %c0_i32_1 = arith.constant 0 : i32
    return %arg0, %c0_i32, %c0_i32_0 : i32, i32, i32
  }
}

</mosaic_0001>

<bundles_post_ra>
// kernel: tpu_custom_call.1
= control target key start
LH: loop header
LB: loop body
LE: loop exit
PB: predicated region body
PF: predicated region fallthrough
CT: control target
= control target key end

     0   :  { %s4668_s0 = inlined_call_operand.vmem [shape: f32[2,8,32], index: 0, kind: input, shape index: {}]   ;;  %s4669_s1 = inlined_call_operand.vmem [shape: f32[2,32,32], index: 1, kind: input, shape index: {}]   ;;  %s4670_s2 = inlined_call_operand.vmem [shape: f32[2,64,32], index: 2, kind: input, shape index: {}]   ;;  %s4671_s3 = inlined_call_operand.vmem [shape: f32[2,32,32], index: 3, kind: input, shape index: {}]   ;;  %s4672_s4 = inlined_call_operand.vmem [shape: f32[2,32,1], index: 4, kind: input, shape index: {}]   ;;  %s4673_s5 = inlined_call_operand.vmem [shape: f32[2,32,1], index: 5, kind: input, shape index: {}]   ;;  %s4674_s6 = inlined_call_operand.vmem [shape: f32[2,32,1], index: 6, kind: input, shape index: {}]   ;;  %s4675_s7 = inlined_call_operand.vmem [shape: f32[2,32,1], index: 7, kind: input, shape index: {}]   ;;  %s4676_s8 = inlined_call_operand.vmem [shape: f32[2,32,1], index: 8, kind: input, shape index: {}]   ;;  %s4677_s9 = inlined_call_operand.vmem [shape: f32[2,64,32], index: 9, kind: input, shape index: {}]   ;;  %s4678_s10 = inlined_call_operand.vmem [shape: f32[2,64,1], index: 10, kind: input, shape index: {}]   ;;  %s4679_s11 = inlined_call_operand.vmem [shape: f32[2,32,64], index: 11, kind: input, shape index: {}]   ;;  %s4680_s12 = inlined_call_operand.vmem [shape: f32[2,32,1], index: 12, kind: input, shape index: {}]   ;;  %s4681_s13 = inlined_call_operand.hbm [shape: f32[2,8,32], index: 13, kind: output, shape index: {}]  }
   0x1   :  { %4683 = sst [smem:[#allocation8_spill]] %s4669_s1 }
   0x2   :  { %4684 = sst [smem:[#allocation9_spill]] %s4670_s2 }
   0x3   :  { %4685 = sst [smem:[#allocation10_spill]] %s4671_s3 }
   0x4   :  { %4686 = sst [smem:[#allocation11_spill]] %s4672_s4 }
   0x5   :  { %4687 = sst [smem:[#allocation12_spill]] %s4673_s5 }
   0x6   :  { %4688 = sst [smem:[#allocation13_spill]] %s4674_s6 }
   0x7   :  { %4689 = sst [smem:[#allocation14_spill]] %s4675_s7 }
   0x8   :  { %4690 = sst [smem:[#allocation15_spill]] %s4681_s13 }
   0x9   :  { %18 = vsyncpa [#allocation4], 0  ;;  %s4214_s25 = smov 0   ;;  %s4216_s26 = smov 0  }
   0xa   :  { %s4218_s27 = smov 0  }
   0xb LB: > { %4691 = sst [smem:[#allocation6_spill]] %s4129_s26  ;;  %s33_s29 = sadd.s32 1, %s4129_s26  ;;  %s4133_s27 = sphi %s4218_s27, %s24_s27   ;;  %s4129_s26 = sphi %s4216_s26, %s4704_s26   ;;  %s4125_s25 = sphi %s4214_s25, %s4703_s25  }
   0xc   : > { %p34_p0 = scmp.ge.s32.totalorder %s33_s29, 2  ;;  %p3638_p1 = scmp.ge.s32.totalorder %s4133_s27, 1 }
   0xd   : > { %p521_p2 = scmp.lt.s32.totalorder %s4133_s27, 3 }
   0xe   : > { %s4706_s29 = smov (%p34_p0, %s33_s29), 0 }
   0xf   : > { %4692 = sst [smem:[#allocation7_spill]] %s4706_s29  ;;  %p522_p3 = pnand %p3638_p1, %p521_p2 }
  0x10   : > { %p626_p4 = scmp.lt.s32.totalorder (!%p522_p3), %s4125_s25, 1  ;;  %s4693_s1 = sld [smem:[#allocation8_spill]] (!%p522_p3) }
  0x11   : > { %525 = sbr.rel (%p522_p3) target bundleno = 3179 (0xc6b), region = 72  ;;  %s4694_s2 = sld [smem:[#allocation9_spill]] (!%p522_p3) }
  0x12   : > { %s4695_s3 = sld [smem:[#allocation10_spill]] (!%p522_p3)  ;;  %p3663_p5 = scmp.ne.s32.totalorder (!%p522_p3), %s4125_s25, 0 }
  0x13   : > { %s4696_s4 = sld [smem:[#allocation11_spill]] (!%p522_p3) }
  0x14   : > { %s4697_s5 = sld [smem:[#allocation12_spill]] (!%p522_p3) }
  0x15   : > { %s4698_s6 = sld [smem:[#allocation13_spill]] (!%p522_p3) }
  0x16   : > { %s627_s30 = scalar_select %p626_p4, %s4125_s25, 1 }
  0x17   : > { %s4699_s7 = sld [smem:[#allocation14_spill]] }
  0x18   : > { %s3722_s14 = sshll.u32 %s627_s30, 5  ;;  %s3723_s15 = sshll.u32 %s627_s30, 6 }
  0x19   : > { %s4240_s18 = scalar_lea.vmem %s4693_s1, %s3722_s14  ;;  %s4245_s21 = scalar_lea.vmem %s4694_s2, %s3723_s15 }
  0x1a   : > { %s4250_s24 = scalar_lea.vmem %s4695_s3, %s3722_s14  ;;  %s4255_s26 = scalar_lea.vmem %s4696_s4, %s3722_s14 }
  0x1b   : > { %s4260_s16 = scalar_lea.vmem %s4697_s5, %s3722_s14  ;;  %s4265_s19 = scalar_lea.vmem %s4698_s6, %s3722_s14 }
  0x1c   : > { %s4275_s28 = scalar_lea.vmem %s4676_s8, %s3722_s14  ;;  %s4280_s13 = scalar_lea.vmem %s4677_s9, %s3723_s15 }
  0x1d   : > { %s4270_s22 = scalar_lea.vmem %s4699_s7, %s3722_s14  ;;  %s4285_s1 = scalar_lea.vmem %s4678_s10, %s3723_s15 }
  0x1e   : > { %s4290_s2 = scalar_lea.vmem %s4679_s11, %s3722_s14  ;;  %s4295_s3 = scalar_lea.vmem %s4680_s12, %s3722_s14 }
  0x1f   : > { %690 = sbr.rel (%p3663_p5) target bundleno = 354 (0x162), region = 76  ;;  %s4135_s5 = smov (!%p3663_p5), 8  }
  0x24   : > { %v3664_v0 = vld [vmem:[%s4668_s0 + $0x8] sm:$0xff]  ;;  %v691_v5 = vld [vmem:[%s4668_s0] sm:$0xff]  ;;  %vm724_vm0 = vcmask 64512   ;;  %vm779_vm1 = vcmask 130112  }
  0x25   : > { %731 = vxpose.xlu0.b32.start.end [1/1] (short) (narrow) %v3664_v0, 32 }
  0xa1   : > { %v747_v1 = vpop.trf.xlu0 }
  0xa2   : > { %767 = vrot.lane.b32.xlu0 %v747_v1, %s4135_s5 }
  0xa5   : > { %v748_v2 = vpop.trf.xlu0 }
  0xa6   : > { %769 = vrot.lane.b32.xlu1 %v748_v2, %s4135_s5 }
  0xa9   : > { %v749_v3 = vpop.trf.xlu0 }
  0xaa   : > { %771 = vrot.lane.b32.xlu1 %v749_v3, %s4135_s5 }
  0xad   : > { %v750_v4 = vpop.trf.xlu0 }
  0xae   : > { %773 = vrot.lane.b32.xlu1 %v750_v4, %s4135_s5 }
  0xd7   : > { %692 = vxpose.xlu1.b32.start.end [1/1] (short) (narrow) %v691_v5, 32 }
 0x114   : > { %v768_v10 = vpop.permute.xlu0 %767 }
 0x118   : > { %v770_v6 = vpop.permute.xlu1 %769 }
 0x11c   : > { %v772_v7 = vpop.permute.xlu1 %771 }
 0x120   : > { %v774_v8 = vpop.permute.xlu1 %773 }
 0x153   : > { %v708_v9 = vpop.trf.xlu1 }
 0x154   : > { %725 = vst.msk [vmem:[#allocation2] sm:$0xff] %vm724_vm0, %v708_v9 }
 0x155   : > { %780 = vst.msk [vmem:[#allocation2] sm:$0xff] %vm779_vm1, %v768_v10 }
 0x157   : > { %v709_v11 = vpop.trf.xlu1 }
 0x158   : > { %726 = vst.msk [vmem:[#allocation2 + $0x8] sm:$0xff] %vm724_vm0, %v709_v11 }
 0x159   : > { %781 = vst.msk [vmem:[#allocation2 + $0x8] sm:$0xff] %vm779_vm1, %v770_v6 }
 0x15b   : > { %v710_v12 = vpop.trf.xlu1 }
 0x15c   : > { %727 = vst.msk [vmem:[#allocation2 + $0x10] sm:$0xff] %vm724_vm0, %v710_v12 }
 0x15d   : > { %782 = vst.msk [vmem:[#allocation2 + $0x10] sm:$0xff] %vm779_vm1, %v772_v7 }
 0x15f   : > { %v711_v13 = vpop.trf.xlu1 }
 0x160   : > { %728 = vst.msk [vmem:[#allocation2 + $0x18] sm:$0xff] %vm724_vm0, %v711_v13 }
 0x161   : > { %783 = vst.msk [vmem:[#allocation2 + $0x18] sm:$0xff] %vm779_vm1, %v774_v8 }
 0x162 PF: > { %v795_v14 = vld [vmem:[%s4265_s19 + $0x18] sm:$0xff]  ;;  %v4136_v16 = vmov 0   ;;  %v790_v17 = vld [vmem:[%s4260_s16 + $0x10] sm:$0xff]  ;;  %v789_v18 = vld [vmem:[%s4260_s16 + $0x8] sm:$0xff]  ;;  %vm796_vm2 = vcmask 130048   ;;  %vm892_vm3 = vcmask 261120  }
 0x163   : > { %v791_v15 = vld [vmem:[%s4260_s16 + $0x18] sm:$0xff]  ;;  %4030 = vset.pattern.permute.xlu1 %v4136_v16  ;;  %4029 = vset.pattern.permute.xlu0 %v4136_v16  ;;  %v4308_v19 = vld [vmem:[#allocation2] sm:$0xff]  ;;  %v4310_v20 = vld [vmem:[#allocation2 + $0x8] sm:$0xff]  ;;  %vm4138_vm4 = vmmov 0   ;;  %vm1255_vm5 = vcmask 64512   ;;  %s4139_s14 = smov 120  }
 0x164   : > { %881 = vperm.xlu1 %4030, %v795_v14   ;;  %857 = vperm.xlu0 %4029, %v791_v15   ;;  %v794_v21 = vld [vmem:[%s4265_s19 + $0x10] sm:$0xff]  ;;  %v788_v22 = vld [vmem:[%s4260_s16] sm:$0xff]  ;;  %v797_v23 = vsel %vm796_vm2, %v4308_v19, 0.0  ;;  %v798_v24 = vsel %vm796_vm2, %v4310_v20, 0.0  ;;  %v793_v26 = vld [vmem:[%s4265_s19 + $0x8] sm:$0xff]  ;;  %s4140_s15 = smov 8  }
 0x165   : > { %v4318_v25 = vld [vmem:[#allocation2 + $0x10] sm:$0xff]  ;;  %v792_v27 = vld [vmem:[%s4265_s19] sm:$0xff]  ;;  %v799_v28 = vadd.f32 %v798_v24, %v797_v23  ;;  %vm3232_vm6 = vcmask 523264   ;;  %p3717_p6 = scmp.ne.s32.totalorder %s4125_s25, 1 }
 0x166   : > { %v800_v29 = vsel %vm796_vm2, %v4318_v25, 0.0  ;;  %v888_v31 = vld [vmem:[%s4240_s18] sm:$0xff] }
 0x167   : > { %v801_v32 = vadd.f32 %v800_v29, %v799_v28  ;;  %3826 = vmatprep.mubr.msk.f32.mxu0 %vm892_vm3, %v888_v31  ;;  %v990_v35 = vld [vmem:[%s4245_s21] sm:$0xff]  ;;  %v890_v28 = vld [vmem:[%s4240_s18 + $0x10] sm:$0xff]  ;;  %v891_v31 = vld [vmem:[%s4240_s18 + $0x18] sm:$0xff] }
 0x168   : > { %852 = vperm.xlu0 %4029, %v790_v17   ;;  %847 = vperm.xlu1 %4030, %v789_v18   ;;  %v4324_v30 = vld [vmem:[#allocation2 + $0x18] sm:$0xff]  ;;  %v992_v29 = vld [vmem:[%s4245_s21 + $0x10] sm:$0xff] }
 0x169   : > { %v802_v33 = vsel %vm796_vm2, %v4324_v30, 0.0  ;;  %3840 = vmatprep.mubr.msk.f32.mxu1 %vm892_vm3, %v990_v35  ;;  %v4137_v35 = vmov 0.0  }
 0x16a   : > { %v803_v34 = vadd.f32 %v802_v33, %v801_v32  ;;  %v993_v32 = vld [vmem:[%s4245_s21 + $0x18] sm:$0xff]  ;;  %v994_v33 = vld [vmem:[%s4245_s21 + $0x20] sm:$0xff] }
 0x16c   : > { %876 = vperm.xlu0 %4029, %v794_v21   ;;  %842 = vperm.xlu1 %4030, %v788_v22   ;;  %v804_v36 = vrot.slane %v803_v34, 4 }
 0x16e   : > { %v805_v37 = vadd.f32 %v804_v36, %v803_v34  ;;  %v995_v34 = vld [vmem:[%s4245_s21 + $0x28] sm:$0xff]  ;;  %v996_v36 = vld [vmem:[%s4245_s21 + $0x30] sm:$0xff] }
 0x170   : > { %871 = vperm.xlu0 %4029, %v793_v26   ;;  %866 = vperm.xlu1 %4030, %v792_v27   ;;  %v806_v38 = vrot.slane %v805_v37, 2  ;;  %v889_v26 = vld [vmem:[%s4240_s18 + $0x8] sm:$0xff] }
 0x171   : > { %v991_v27 = vld [vmem:[%s4245_s21 + $0x8] sm:$0xff] }
 0x172   : > { %v807_v39 = vadd.f32 %v806_v38, %v805_v37  ;;  %v997_v37 = vld [vmem:[%s4245_s21 + $0x38] sm:$0xff] }
 0x174   : > { %v808_v40 = vrot.slane %v807_v39, 1 }
 0x176   : > { %v809_v41 = vadd.f32 %v808_v40, %v807_v39 }
 0x178   : > { %v811_v42 = vmul.f32 0.03125, %v809_v41 }
 0x17a   : > { %v812_v43 = vsub.f32 %v4308_v19, %v811_v42  ;;  %v813_v44 = vsub.f32 %v4310_v20, %v811_v42  ;;  %v814_v45 = vsub.f32 %v4318_v25, %v811_v42  ;;  %v815_v48 = vsub.f32 %v4324_v30, %v811_v42 }
 0x17c   : > { %v816_v46 = vmul.f32 %v812_v43, %v812_v43  ;;  %v817_v47 = vmul.f32 %v813_v44, %v813_v44  ;;  %v818_v49 = vmul.f32 %v814_v45, %v814_v45  ;;  %v819_v53 = vmul.f32 %v815_v48, %v815_v48 }
 0x17e   : > { %v820_v50 = vsel %vm796_vm2, %v816_v46, 0.0  ;;  %v821_v51 = vsel %vm796_vm2, %v817_v47, 0.0  ;;  %v823_v54 = vsel %vm796_vm2, %v818_v49, 0.0  ;;  %v825_v56 = vsel %vm796_vm2, %v819_v53, 0.0 }
 0x17f   : > { %v822_v52 = vadd.f32 %v821_v51, %v820_v50 }
 0x181   : > { %v824_v55 = vadd.f32 %v823_v54, %v822_v52 }
 0x183   : > { %v826_v57 = vadd.f32 %v825_v56, %v824_v55 }
 0x185   : > { %v827_v58 = vrot.slane %v826_v57, 4 }
 0x187   : > { %v828_v59 = vadd.f32 %v827_v58, %v826_v57 }
 0x189   : > { %v829_v60 = vrot.slane %v828_v59, 2 }
 0x18b   : > { %v830_v61 = vadd.f32 %v829_v60, %v828_v59 }
 0x18d   : > { %v831_v62 = vrot.slane %v830_v61, 1 }
 0x18f   : > { %v832_v63 = vadd.f32 %v831_v62, %v830_v61 }
 0x191   : > { %v833_v0 = vmul.f32 0.03125, %v832_v63 }
 0x193   : > { %v834_v1 = vadd.f32 1e-05, %v833_v0 }
 0x195   : > { %4031 = vrsqrt.f32 %v834_v1 }
 0x1a2   : > { %v4032_v2 = vpop.eup %4031 }
 0x1a3   : > { %v839_v3 = vmul.f32 %v4032_v2, %v815_v48  ;;  %v838_v8 = vmul.f32 %v4032_v2, %v814_v45  ;;  %v837_v12 = vmul.f32 %v4032_v2, %v813_v44  ;;  %v836_v16 = vmul.f32 %v4032_v2, %v812_v43 }
 0x1df   : > { %v882_v4 = vpop.permute.xlu1 %881  ;;  %v858_v5 = vpop.permute.xlu0 %857 }
 0x1e0   : > { %v863_v6 = vmul.f32 %v858_v5, %v839_v3 }
 0x1e2   : > { %v887_v7 = vadd.f32 %v882_v4, %v863_v6 }
 0x1e3   : > { %v853_v9 = vpop.permute.xlu0 %852  ;;  %v848_v10 = vpop.permute.xlu1 %847 }
 0x1e4   : > { %3818 = vmatprep.subr.mxu0 %v887_v7  ;;  %3832 = vmatprep.subr.mxu1 %v887_v7  ;;  %v862_v11 = vmul.f32 %v853_v9, %v838_v8  ;;  %v861_v17 = vmul.f32 %v848_v10, %v837_v12 }
 0x1e5   : > { %3819 = vmatpush3.msra.mxu0 %v887_v7  ;;  %3833 = vmatpush3.msra.mxu1 %v887_v7 }
 0x1e7   : > { %v877_v13 = vpop.permute.xlu0 %876  ;;  %v843_v14 = vpop.permute.xlu1 %842 }
 0x1e8   : > { %v886_v15 = vadd.f32 %v877_v13, %v862_v11  ;;  %v860_v22 = vmul.f32 %v843_v14, %v836_v16 }
 0x1ea   : > { %3820 = vmatprep.subr.mxu0 %v886_v15  ;;  %3834 = vmatprep.subr.mxu1 %v886_v15 }
 0x1eb   : > { %v872_v18 = vpop.permute.xlu0 %871  ;;  %v867_v21 = vpop.permute.xlu1 %866  ;;  %3821 = vmatpush3.msra.mxu0 %v886_v15  ;;  %3835 = vmatpush3.msra.mxu1 %v886_v15 }
 0x1ec   : > { %v885_v23 = vadd.f32 %v872_v18, %v861_v17  ;;  %v884_v24 = vadd.f32 %v867_v21, %v860_v22 }
 0x1ee   : > { %3822 = vmatprep.subr.mxu0 %v885_v23  ;;  %3836 = vmatprep.subr.mxu1 %v885_v23 }
 0x1ef   : > { %3823 = vmatpush3.msra.mxu0 %v885_v23  ;;  %3837 = vmatpush3.msra.mxu1 %v885_v23 }
 0x1f0   : > { %3824 = vmatprep.subr.mxu0 %v884_v24  ;;  %3838 = vmatprep.subr.mxu1 %v884_v24 }
 0x1f1   : > { %3825 = vmatpush3.msra.mxu0 %v884_v24  ;;  %3839 = vmatpush3.msra.mxu1 %v884_v24 }
 0x1f2   : > { %3827 = vmatmul.mubr.msk.f32.vlgmr.msra.gmra.mxu0 %vm892_vm3, %v889_v26  ;;  %3841 = vmatmul.mubr.msk.f32.vlgmr.msra.gmra.mxu1 %vm892_vm3, %v991_v27 }
 0x1f3   : > { %3829 = vmatprep.mubr.msk.f32.mxu0 %vm892_vm3, %v890_v28  ;;  %3843 = vmatprep.mubr.msk.f32.mxu1 %vm892_vm3, %v992_v29 }
 0x1f4   : > { %3852 = vmatprep.subr.mxu1 %v4137_v35  ;;  %3857 = vmatprep.subr.mxu0 %v4137_v35 }
 0x1f6   : > { %3830 = vmatmul.mubr.msk.f32.gmra.mxu0 %vm892_vm3, %v891_v31  ;;  %3844 = vmatmul.mubr.msk.f32.gmra.mxu1 %vm892_vm3, %v993_v32 }
 0x1f7   : > { %3846 = vmatprep.mubr.msk.f32.mxu1 %vm892_vm3, %v994_v33  ;;  %3859 = vmatprep.mubr.msk.f32.mxu0 %vm4138_vm4, %v4137_v35 }
 0x1fa   : > { %3847 = vmatmul.mubr.msk.f32.gmra.mxu1 %vm892_vm3, %v995_v34 }
 0x1fb   : > { %3849 = vmatprep.mubr.msk.f32.mxu1 %vm892_vm3, %v996_v36 }
 0x1fe   : > { %3850 = vmatmul.mubr.msk.f32.gmra.mxu1 %vm892_vm3, %v997_v37 }
 0x1ff   : > { %3854 = vmatprep.mubr.msk.f32.mxu1 %vm4138_vm4, %v4137_v35 }
 0x2b2   : > { %v3828_v38 = vpop.f32.mrf.mxu0  ;;  %v3842_v39 = vpop.f32.mrf.mxu1 }
 0x2b3   : > { %1159 = vxpose.xlu1.b32.start.end [1/1] (short) (narrow) %v3828_v38, 8  ;;  %3858 = vmatpush3.msra.mxu0 %v3842_v39 }
 0x2b4   : > { %v971_v40 = vpop.f32.mrf.mxu0  ;;  %v1088_v41 = vpop.f32.mrf.mxu1  ;;  %3862 = vmatprep.subr.mxu0 %v4137_v35 }
 0x2b5   : > { %1127 = vxpose.xlu0.b32.start.end [1/1] (short) (narrow) %v971_v40, 8  ;;  %3853 = vmatpush3.msra.mxu1 %v1088_v41 }
 0x2b6   : > { %3867 = vmatprep.subr.mxu1 %v4137_v35  ;;  %v3831_v42 = vpop.f32.mrf.mxu0  ;;  %v4368_v44 = vpop.f32.mrf.mxu1 }
 0x2b8   : > { %v981_v43 = vpop.f32.mrf.mxu0  ;;  %v4370_v45 = vpop.f32.mrf.mxu1 }
 0x2b9   : > { %1223 = vxpose.xlu0.b32.start.end [1/1] (short) (narrow) %v3831_v42, 8 }
 0x2ba   : > { %v4388_v50 = vpop.f32.mrf.mxu1 }
 0x2bc   : > { %v4390_v51 = vpop.f32.mrf.mxu1 }
 0x2bd   : > { %1191 = vxpose.xlu0.b32.start.end [1/1] (short) (narrow) %v981_v43, 8 }
 0x2be   : > { %v4392_v52 = vpop.f32.mrf.mxu1 }
 0x2c0   : > { %v4394_v53 = vpop.f32.mrf.mxu1 }
 0x32f   : > { %v1175_v46 = vpop.trf.xlu1 }
 0x330   : > { %3860 = vmatmul.mubr.msk.f32.vlgmr.msra.gmra.mxu0 %vm1255_vm5, %v1175_v46 }
 0x331   : > { %v1143_v47 = vpop.trf.xlu0  ;;  %3863 = vmatpush3.msra.mxu0 %v4370_v45  ;;  %3864 = vmatprep.mubr.msk.f32.mxu0 %vm4138_vm4, %v4137_v35 }
 0x332   : > { %3855 = vmatmul.mubr.msk.f32.vlgmr.msra.gmra.mxu1 %vm1255_vm5, %v1143_v47  ;;  %3872 = vmatprep.subr.mxu0 %v4137_v35 }
 0x333   : > { %3868 = vmatpush3.msra.mxu1 %v4368_v44  ;;  %3869 = vmatprep.mubr.msk.f32.mxu1 %vm4138_vm4, %v4137_v35 }
 0x334   : > { %3877 = vmatprep.subr.mxu1 %v4137_v35 }
 0x335   : > { %v1239_v48 = vpop.trf.xlu0 }
 0x336   : > { %3870 = vmatmul.mubr.msk.f32.vlgmr.msra.gmra.mxu1 %vm1255_vm5, %v1239_v48 }
 0x337   : > { %3879 = vmatprep.mubr.msk.f32.mxu1 %vm4138_vm4, %v4137_v35 }
 0x339   : > { %v1207_v49 = vpop.trf.xlu0 }
 0x33a   : > { %3865 = vmatmul.mubr.msk.f32.vlgmr.msra.gmra.mxu0 %vm1255_vm5, %v1207_v49 }
 0x33b   : > { %3874 = vmatprep.mubr.msk.f32.mxu0 %vm4138_vm4, %v4137_v35 }
 0x3f0   : > { %v1398_v54 = vpop.f32.mrf.mxu0 }
 0x3f1   : > { %v1551_v55 = vsel %vm1255_vm5, %v1398_v54, -inf }
 0x3f2   : > { %v1325_v56 = vpop.f32.mrf.mxu1  ;;  %1552 = vmax.xlane.f32.xlu0 %v1551_v55  ;;  %v3861_v57 = vpop.f32.mrf.mxu0 }
 0x3f3   : > { %v1548_v58 = vsel %vm1255_vm5, %v1325_v56, -inf }
 0x3f4   : > { %1549 = vmax.xlane.f32.xlu1 %v1548_v58  ;;  %v3856_v59 = vpop.f32.mrf.mxu1 }
 0x3f6   : > { %v1544_v60 = vpop.f32.mrf.mxu1 }
 0x3f7   : > { %v1557_v61 = vsel %vm1255_vm5, %v1544_v60, -inf }
 0x3f8   : > { %1558 = vmax.xlane.f32.xlu1 %v1557_v61  ;;  %v3871_v62 = vpop.f32.mrf.mxu1 }
 0x3fa   : > { %v1471_v63 = vpop.f32.mrf.mxu0 }
 0x3fb   : > { %v1554_v0 = vsel %vm1255_vm5, %v1471_v63, -inf }
 0x3fc   : > { %1555 = vmax.xlane.f32.xlu0 %v1554_v0  ;;  %v3866_v1 = vpop.f32.mrf.mxu0 }
 0x409   : > { %1902 = vrot.lane.b32.xlu1 %v3828_v38, %s4139_s14 }
 0x40d   : > { %1906 = vrot.lane.b32.xlu1 %v3831_v42, %s4139_s14 }
 0x411   : > { %1904 = vrot.lane.b32.xlu1 %v981_v43, %s4139_s14 }
 0x412   : > { %1900 = vrot.lane.b32.xlu0 %v971_v40, %s4139_s14 }
 0x415   : > { %2041 = vrot.lane.b32.xlu1 %v1088_v41, %s4139_s14 }
 0x416   : > { %2118 = vrot.lane.b32.xlu0 %v3842_v39, %s4139_s14 }
 0x47b   : > { %v1553_v2 = vpop.xlane.xlu0 %1552 }
 0x47c   : > { %v1561_v3 = vsub.f32 %v1398_v54, %v1553_v2 }
 0x47d   : > { %v1550_v4 = vpop.xlane.xlu1 %1549 }
 0x47e   : > { %v1566_v5 = vmul.f32 1.442695, %v1561_v3  ;;  %v1560_v6 = vsub.f32 %v1325_v56, %v1550_v4 }
 0x480   : > { %4033 = vpow2.f32 %v1566_v5  ;;  %v1564_v7 = vmul.f32 1.442695, %v1560_v6 }
 0x481   : > { %v1559_v8 = vpop.xlane.xlu1 %1558 }
 0x482   : > { %4035 = vpow2.f32 %v1564_v7  ;;  %v1563_v9 = vsub.f32 %v1544_v60, %v1559_v8 }
 0x484   : > { %v1570_v10 = vmul.f32 1.442695, %v1563_v9 }
 0x485   : > { %v1556_v11 = vpop.xlane.xlu0 %1555  ;;  %v1903_v24 = vpop.permute.xlu1 %1902 }
 0x486   : > { %4037 = vpow2.f32 %v1570_v10  ;;  %v1562_v12 = vsub.f32 %v1471_v63, %v1556_v11 }
 0x488   : > { %v1568_v13 = vmul.f32 1.442695, %v1562_v12 }
 0x489   : > { %v1907_v26 = vpop.permute.xlu1 %1906  ;;  %v1901_v27 = vpop.permute.xlu0 %1900 }
 0x48a   : > { %4039 = vpow2.f32 %v1568_v13 }
 0x48d   : > { %v4034_v14 = vpop.eup %4033  ;;  %v1905_v28 = vpop.permute.xlu1 %1904 }
 0x48e   : > { %v1575_v15 = vsel %vm1255_vm5, %v4034_v14, 0.0  ;;  %v2119_v31 = vpop.permute.xlu0 %2118 }
 0x48f   : > { %v4036_v16 = vpop.eup %4035  ;;  %1576 = vadd.xlane.f32.xlu1 %v1575_v15 }
 0x490   : > { %v1572_v17 = vsel %vm1255_vm5, %v4036_v16, 0.0 }
 0x491   : > { %1573 = vadd.xlane.f32.xlu0 %v1572_v17  ;;  %v2042_v29 = vpop.permute.xlu1 %2041 }
 0x493   : > { %v4038_v18 = vpop.eup %4037 }
 0x494   : > { %v1581_v21 = vsel %vm1255_vm5, %v4038_v18, 0.0 }
 0x495   : > { %1582 = vadd.xlane.f32.xlu1 %v1581_v21 }
 0x497   : > { %v4040_v22 = vpop.eup %4039 }
 0x498   : > { %v1578_v23 = vsel %vm1255_vm5, %v4040_v22, 0.0 }
 0x499   : > { %1579 = vadd.xlane.f32.xlu0 %v1578_v23 }
 0x4a6   : > { %2195 = vrot.lane.b32.xlu1 %v4370_v45, %s4139_s14 }
 0x4af   : > { %2272 = vrot.lane.b32.xlu0 %v4368_v44, %s4139_s14 }
 0x4cd   : > { %1944 = vxpose.xlu0.b32.start.end [1/1] (short) (narrow) %v1903_v24, 8 }
 0x4cf   : > { %1912 = vxpose.xlu1.b32.start.end [1/1] (short) (narrow) %v1901_v27, 8 }
 0x4d1   : > { %2008 = vxpose.xlu0.b32.start.end [1/1] (short) (narrow) %v1907_v26, 8 }
 0x4d5   : > { %1976 = vxpose.xlu0.b32.start.end [1/1] (short) (narrow) %v1905_v28, 8 }
 0x518   : > { %v1577_v32 = vpop.xlane.xlu1 %1576 }
 0x519   : > { %4041 = vrcp.f32 %v1577_v32 }
 0x51a   : > { %v1574_v33 = vpop.xlane.xlu0 %1573 }
 0x51b   : > { %4043 = vrcp.f32 %v1574_v33 }
 0x51e   : > { %v1583_v34 = vpop.xlane.xlu1 %1582 }
 0x51f   : > { %4045 = vrcp.f32 %v1583_v34 }
 0x522   : > { %v1580_v36 = vpop.xlane.xlu0 %1579  ;;  %v2196_v46 = vpop.permute.xlu1 %2195 }
 0x523   : > { %4047 = vrcp.f32 %v1580_v36 }
 0x526   : > { %v4042_v37 = vpop.eup %4041  ;;  %v2273_v45 = vpop.permute.xlu0 %2272 }
 0x527   : > { %v1589_v38 = vmul.f32 %v4042_v37, %v4034_v14 }
 0x528   : > { %v4044_v39 = vpop.eup %4043 }
 0x529   : > { %3878 = vmatpush3.xpose.msk.msra.mxu1 %vm1255_vm5, %v1589_v38  ;;  %v1588_v40 = vmul.f32 %v4044_v39, %v4036_v16 }
 0x52a   : > { %3887 = vmatprep.subr.mxu1 %v4137_v35 }
 0x52b   : > { %3873 = vmatpush3.xpose.msk.msra.mxu0 %vm1255_vm5, %v1588_v40 }
 0x52c   : > { %v4046_v41 = vpop.eup %4045  ;;  %3880 = vmatmul.mubr.msk.f32.vlgmr.msra.gmra.mxu1 %vm1255_vm5, %v4388_v50  ;;  %3882 = vmatprep.subr.mxu0 %v4137_v35 }
 0x52d   : > { %v1591_v42 = vmul.f32 %v4046_v41, %v4038_v18  ;;  %3889 = vmatprep.mubr.msk.f32.mxu1 %vm4138_vm4, %v4137_v35 }
 0x52e   : > { %3875 = vmatmul.mubr.msk.f32.vlgmr.msra.gmra.mxu0 %vm1255_vm5, %v4390_v51 }
 0x52f   : > { %3888 = vmatpush3.xpose.msk.msra.mxu1 %vm1255_vm5, %v1591_v42  ;;  %3884 = vmatprep.mubr.msk.f32.mxu0 %vm4138_vm4, %v4137_v35 }
 0x530   : > { %v4048_v43 = vpop.eup %4047  ;;  %3897 = vmatprep.subr.mxu1 %v4137_v35 }
 0x531   : > { %v1590_v44 = vmul.f32 %v4048_v43, %v4040_v22 }
 0x532   : > { %3890 = vmatmul.mubr.msk.f32.vlgmr.msra.gmra.mxu1 %vm1255_vm5, %v4392_v52 }
 0x533   : > { %3883 = vmatpush3.xpose.msk.msra.mxu0 %vm1255_vm5, %v1590_v44  ;;  %3898 = vmatpush3.msra.mxu1 %v2119_v31 }
 0x534   : > { %3892 = vmatprep.subr.mxu0 %v4137_v35  ;;  %3899 = vmatprep.mubr.msk.f32.mxu1 %vm4138_vm4, %v4137_v35 }
 0x535   : > { %3907 = vmatprep.subr.mxu1 %v4137_v35 }
 0x536   : > { %3885 = vmatmul.mubr.msk.f32.vlgmr.msra.gmra.mxu0 %vm1255_vm5, %v4394_v53 }
 0x537   : > { %3893 = vmatpush3.msra.mxu0 %v2042_v29  ;;  %3894 = vmatprep.mubr.msk.f32.mxu0 %vm4138_vm4, %v4137_v35 }
 0x538   : > { %3902 = vmatprep.subr.mxu0 %v4137_v35 }
 0x549   : > { %v1960_v47 = vpop.trf.xlu0 }
 0x54a   : > { %3900 = vmatmul.mubr.msk.f32.vlgmr.msra.gmra.mxu1 %vm1255_vm5, %v1960_v47 }
 0x54b   : > { %3908 = vmatpush3.msra.mxu1 %v2273_v45  ;;  %v1928_v48 = vpop.trf.xlu1  ;;  %3909 = vmatprep.mubr.msk.f32.mxu1 %vm4138_vm4, %v4137_v35 }
 0x54c   : > { %3895 = vmatmul.mubr.msk.f32.vlgmr.msra.gmra.mxu0 %vm1255_vm5, %v1928_v48  ;;  %3917 = vmatprep.subr.mxu1 %v4137_v35 }
 0x54d   : > { %3903 = vmatpush3.msra.mxu0 %v2196_v46  ;;  %v2024_v49 = vpop.trf.xlu0  ;;  %3904 = vmatprep.mubr.msk.f32.mxu0 %vm4138_vm4, %v4137_v35 }
 0x54e   : > { %3910 = vmatmul.mubr.msk.f32.vlgmr.msra.gmra.mxu1 %vm1255_vm5, %v2024_v49  ;;  %3912 = vmatprep.subr.mxu0 %v4137_v35 }
 0x54f   : > { %3919 = vmatprep.mubr.msk.f32.mxu1 %vm4138_vm4, %v4137_v35 }
 0x551   : > { %v1992_v54 = vpop.trf.xlu0 }
 0x552   : > { %3905 = vmatmul.mubr.msk.f32.vlgmr.msra.gmra.mxu0 %vm1255_vm5, %v1992_v54 }
 0x553   : > { %3914 = vmatprep.mubr.msk.f32.mxu0 %vm4138_vm4, %v4137_v35 }
 0x5ec   : > { %v4454_v55 = vpop.f32.mrf.mxu1 }
 0x5ee   : > { %v4456_v56 = vpop.f32.mrf.mxu0  ;;  %v3881_v57 = vpop.f32.mrf.mxu1 }
 0x5ef   : > { %v2720_v57 = vld [vmem:[%s4250_s24] sm:$0xff] }
 0x5f0   : > { %v3876_v58 = vpop.f32.mrf.mxu0 }
 0x5f2   : > { %v4458_v59 = vpop.f32.mrf.mxu1 }
 0x5f4   : > { %v3891_v60 = vpop.f32.mrf.mxu1 }
 0x5f6   : > { %v4460_v61 = vpop.f32.mrf.mxu0 }
 0x5f8   : > { %v3886_v62 = vpop.f32.mrf.mxu0 }
 0x60a   : > { %v2190_v63 = vpop.f32.mrf.mxu1 }
 0x60b   : > { %v2351_v0 = vsel %vm1255_vm5, %v2190_v63, -inf }
 0x60c   : > { %2352 = vmax.xlane.f32.xlu0 %v2351_v0  ;;  %v2113_v1 = vpop.f32.mrf.mxu0  ;;  %v3901_v2 = vpop.f32.mrf.mxu1  ;;  %v2724_v0 = vld [vmem:[%s4255_s26] sm:$0xff] }
 0x60d   : > { %v2348_v3 = vsel %vm1255_vm5, %v2113_v1, -inf  ;;  %v2726_v2 = vld [vmem:[%s4255_s26 + $0x10] sm:$0xff] }
 0x60e   : > { %v2344_v4 = vpop.f32.mrf.mxu1  ;;  %2349 = vmax.xlane.f32.xlu1 %v2348_v3  ;;  %v3896_v5 = vpop.f32.mrf.mxu0  ;;  %v2727_v3 = vld [vmem:[%s4255_s26 + $0x18] sm:$0xff] }
 0x60f   : > { %v2357_v7 = vsel %vm1255_vm5, %v2344_v4, -inf  ;;  %v2851_v5 = vld [vmem:[%s4270_s22 + $0x10] sm:$0xff] }
 0x610   : > { %v3911_v6 = vpop.f32.mrf.mxu1 }
 0x611   : > { %v2856_v6 = vld [vmem:[%s4275_s28 + $0x18] sm:$0xff] }
 0x612   : > { %2358 = vmax.xlane.f32.xlu1 %v2357_v7  ;;  %v2267_v8 = vpop.f32.mrf.mxu0  ;;  %v2850_v7 = vld [vmem:[%s4270_s22 + $0x8] sm:$0xff] }
 0x613   : > { %v2354_v9 = vsel %vm1255_vm5, %v2267_v8, -inf }
 0x614   : > { %2355 = vmax.xlane.f32.xlu0 %v2354_v9  ;;  %v3906_v10 = vpop.f32.mrf.mxu0  ;;  %v2849_v9 = vld [vmem:[%s4270_s22] sm:$0xff] }
 0x615   : > { %v2854_v10 = vld [vmem:[%s4275_s28 + $0x8] sm:$0xff] }
 0x623   : > { %2469 = vrot.lane.b32.xlu1 %v4388_v50, %s4139_s14 }
 0x695   : > { %v2353_v11 = vpop.xlane.xlu0 %2352 }
 0x696   : > { %v2361_v12 = vsub.f32 %v2190_v63, %v2353_v11  ;;  %v2853_v11 = vld [vmem:[%s4275_s28] sm:$0xff] }
 0x697   : > { %v2350_v13 = vpop.xlane.xlu1 %2349 }
 0x698   : > { %v2366_v14 = vmul.f32 1.442695, %v2361_v12  ;;  %v2360_v15 = vsub.f32 %v2113_v1, %v2350_v13  ;;  %v2725_v1 = vld [vmem:[%s4255_s26 + $0x8] sm:$0xff]  ;;  %v2962_v12 = vld [vmem:[%s4285_s1 + $0x38] sm:$0xff]  ;;  %v2961_v13 = vld [vmem:[%s4285_s1 + $0x30] sm:$0xff]  ;;  %s4141_s26 = smov (!%p3717_p6), 120  }
 0x69a   : > { %4049 = vpow2.f32 %v2366_v14  ;;  %v2364_v16 = vmul.f32 1.442695, %v2360_v15  ;;  %v2960_v14 = vld [vmem:[%s4285_s1 + $0x28] sm:$0xff]  ;;  %v2959_v15 = vld [vmem:[%s4285_s1 + $0x20] sm:$0xff] }
 0x69b   : > { %v2359_v17 = vpop.xlane.xlu1 %2358 }
 0x69c   : > { %4051 = vpow2.f32 %v2364_v16  ;;  %v2363_v18 = vsub.f32 %v2344_v4, %v2359_v17  ;;  %v2852_v4 = vld [vmem:[%s4270_s22 + $0x18] sm:$0xff]  ;;  %v2957_v17 = vld [vmem:[%s4285_s1 + $0x10] sm:$0xff] }
 0x69d   : > { %v2356_v21 = vpop.xlane.xlu0 %2355  ;;  %v2958_v16 = vld [vmem:[%s4285_s1 + $0x18] sm:$0xff] }
 0x69e   : > { %v2370_v22 = vmul.f32 1.442695, %v2363_v18  ;;  %v2362_v23 = vsub.f32 %v2267_v8, %v2356_v21  ;;  %v2855_v8 = vld [vmem:[%s4275_s28 + $0x10] sm:$0xff]  ;;  %v2956_v18 = vld [vmem:[%s4285_s1 + $0x8] sm:$0xff]  ;;  %v2955_v21 = vld [vmem:[%s4285_s1] sm:$0xff] }
 0x69f   : > { %v2470_v34 = vpop.permute.xlu1 %2469 }
 0x6a0   : > { %4053 = vpow2.f32 %v2370_v22  ;;  %v2368_v24 = vmul.f32 1.442695, %v2362_v23  ;;  %v3208_v22 = vld [vmem:[%s4295_s3] sm:$0xff]  ;;  %v3209_v23 = vld [vmem:[%s4295_s3 + $0x8] sm:$0xff] }
 0x6a2   : > { %4055 = vpow2.f32 %v2368_v24  ;;  %v3210_v24 = vld [vmem:[%s4295_s3 + $0x10] sm:$0xff] }
 0x6a7   : > { %v4050_v26 = vpop.eup %4049 }
 0x6a8   : > { %v2375_v27 = vsel %vm1255_vm5, %v4050_v26, 0.0 }
 0x6a9   : > { %v4052_v50 = vpop.eup %4051  ;;  %2376 = vadd.xlane.f32.xlu1 %v2375_v27 }
 0x6aa   : > { %v2372_v28 = vsel %vm1255_vm5, %v4052_v50, 0.0 }
 0x6ab   : > { %2373 = vadd.xlane.f32.xlu0 %v2372_v28 }
 0x6ad   : > { %v4054_v29 = vpop.eup %4053 }
 0x6ae   : > { %v2381_v31 = vsel %vm1255_vm5, %v4054_v29, 0.0 }
 0x6af   : > { %v4056_v32 = vpop.eup %4055  ;;  %2382 = vadd.xlane.f32.xlu1 %v2381_v31 }
 0x6b0   : > { %v2378_v33 = vsel %vm1255_vm5, %v4056_v32, 0.0 }
 0x6b1   : > { %2379 = vadd.xlane.f32.xlu0 %v2378_v33 }
 0x6c0   : > { %2623 = vrot.lane.b32.xlu1 %v4392_v52, %s4139_s14 }
 0x6c4   : > { %2546 = vrot.lane.b32.xlu1 %v4394_v53, %s4139_s14 }
 0x6c7   : > { %2392 = vrot.lane.b32.xlu0 %v4390_v51, %s4139_s14 }
 0x732   : > { %v2377_v36 = vpop.xlane.xlu1 %2376 }
 0x733   : > { %4057 = vrcp.f32 %v2377_v36  ;;  %v2722_v36 = vld [vmem:[%s4250_s24 + $0x10] sm:$0xff] }
 0x734   : > { %v2374_v37 = vpop.xlane.xlu0 %2373 }
 0x735   : > { %4059 = vrcp.f32 %v2374_v37  ;;  %v2947_v37 = vld [vmem:[%s4280_s13] sm:$0xff] }
 0x738   : > { %v2383_v38 = vpop.xlane.xlu1 %2382 }
 0x739   : > { %4061 = vrcp.f32 %v2383_v38 }
 0x73a   : > { %v2380_v39 = vpop.xlane.xlu0 %2379 }
 0x73b   : > { %4063 = vrcp.f32 %v2380_v39 }
 0x73c   : > { %v2624_v53 = vpop.permute.xlu1 %2623 }
 0x73e   : > { %v2393_v43 = vpop.permute.xlu0 %2392 }
 0x740   : > { %v4058_v40 = vpop.eup %4057  ;;  %v2547_v47 = vpop.permute.xlu1 %2546 }
 0x741   : > { %v2389_v41 = vmul.f32 %v4058_v40, %v4050_v26  ;;  %v3211_v26 = vld [vmem:[%s4295_s3 + $0x18] sm:$0xff] }
 0x742   : > { %v4060_v42 = vpop.eup %4059 }
 0x743   : > { %3918 = vmatpush3.xpose.msk.msra.mxu1 %vm1255_vm5, %v2389_v41  ;;  %v2388_v52 = vmul.f32 %v4060_v42, %v4052_v50 }
 0x744   : > { %3927 = vmatprep.subr.mxu1 %v4137_v35 }
 0x745   : > { %3913 = vmatpush3.xpose.msk.msra.mxu0 %vm1255_vm5, %v2388_v52 }
 0x746   : > { %v4062_v51 = vpop.eup %4061  ;;  %3920 = vmatmul.mubr.msk.f32.vlgmr.msra.gmra.mxu1 %vm1255_vm5, %v2470_v34  ;;  %3922 = vmatprep.subr.mxu0 %v4137_v35  ;;  %v2721_v34 = vld [vmem:[%s4250_s24 + $0x8] sm:$0xff] }
 0x747   : > { %v2391_v44 = vmul.f32 %v4062_v51, %v4054_v29  ;;  %3929 = vmatprep.mubr.msk.f32.mxu1 %vm4138_vm4, %v4137_v35 }
 0x748   : > { %v4064_v45 = vpop.eup %4063  ;;  %3915 = vmatmul.mubr.msk.f32.vlgmr.msra.gmra.mxu0 %vm1255_vm5, %v2393_v43 }
 0x749   : > { %3928 = vmatpush3.xpose.msk.msra.mxu1 %vm1255_vm5, %v2391_v44  ;;  %v2390_v46 = vmul.f32 %v4064_v45, %v4056_v32  ;;  %3924 = vmatprep.mubr.msk.f32.mxu0 %vm4138_vm4, %v4137_v35 }
 0x74b   : > { %3923 = vmatpush3.xpose.msk.msra.mxu0 %vm1255_vm5, %v2390_v46 }
 0x74c   : > { %3930 = vmatmul.mubr.msk.f32.vlgmr.msra.gmra.mxu1 %vm1255_vm5, %v2624_v53 }
 0x74d   : > { %3954 = vmatprep.mubr.msk.f32.mxu1 %vm892_vm3, %v2947_v37 }
 0x74e   : > { %3925 = vmatmul.mubr.msk.f32.vlgmr.msra.gmra.mxu0 %vm1255_vm5, %v2547_v47 }
 0x74f   : > { %3940 = vmatprep.mubr.msk.f32.mxu0 %vm892_vm3, %v2720_v57 }
 0x806   : > { %v2542_v48 = vpop.f32.mrf.mxu1 }
 0x808   : > { %v2465_v49 = vpop.f32.mrf.mxu0  ;;  %v3921_v54 = vpop.f32.mrf.mxu1 }
 0x80a   : > { %v3916_v58 = vpop.f32.mrf.mxu0 }
 0x80c   : > { %v2696_v60 = vpop.f32.mrf.mxu1 }
 0x80d   : > { %2710 = vrot.lane.b32.xlu0 %v2696_v60, %s4140_s15 }
 0x80e   : > { %v2619_v35 = vpop.f32.mrf.mxu0  ;;  %v3931_v62 = vpop.f32.mrf.mxu1 }
 0x80f   : > { %2708 = vrot.lane.b32.xlu1 %v2619_v35, %s4140_s15 }
 0x810   : > { %v3926_v63 = vpop.f32.mrf.mxu0 }
 0x811   : > { %2706 = vrot.lane.b32.xlu0 %v2542_v48, %s4140_s15 }
 0x813   : > { %2704 = vrot.lane.b32.xlu1 %v2465_v49, %s4140_s15 }
 0x815   : > { %2730 = vperm.xlu0 %4029, %v2724_v0  }
 0x817   : > { %2735 = vperm.xlu1 %4030, %v2725_v1  }
 0x819   : > { %2740 = vperm.xlu0 %4029, %v2726_v2  }
 0x81b   : > { %2745 = vperm.xlu1 %4030, %v2727_v3  }
 0x81d   : > { %2916 = vperm.xlu0 %4029, %v2852_v4  }
 0x81f   : > { %2911 = vperm.xlu1 %4030, %v2851_v5  }
 0x821   : > { %2940 = vperm.xlu0 %4029, %v2856_v6  }
 0x823   : > { %2906 = vperm.xlu1 %4030, %v2850_v7  }
 0x825   : > { %2935 = vperm.xlu0 %4029, %v2855_v8  }
 0x827   : > { %2901 = vperm.xlu1 %4030, %v2849_v9  }
 0x829   : > { %2930 = vperm.xlu0 %4029, %v2854_v10  }
 0x82b   : > { %2925 = vperm.xlu1 %4030, %v2853_v11  }
 0x82d   : > { %3000 = vperm.xlu0 %4029, %v2962_v12  }
 0x82f   : > { %2995 = vperm.xlu1 %4030, %v2961_v13  }
 0x831   : > { %2990 = vperm.xlu0 %4029, %v2960_v14  }
 0x833   : > { %2985 = vperm.xlu1 %4030, %v2959_v15  }
 0x835   : > { %2980 = vperm.xlu0 %4029, %v2958_v16  }
 0x837   : > { %2975 = vperm.xlu1 %4030, %v2957_v17  }
 0x839   : > { %2970 = vperm.xlu0 %4029, %v2956_v18  }
 0x83b   : > { %2965 = vperm.xlu1 %4030, %v2955_v21  }
 0x83d   : > { %3214 = vperm.xlu0 %4029, %v3208_v22  }
 0x83f   : > { %3219 = vperm.xlu1 %4030, %v3209_v23  }
 0x841   : > { %3224 = vperm.xlu0 %4029, %v3210_v24  }
 0x843   : > { %3229 = vperm.xlu1 %4030, %v3211_v26  }
 0x87f   : > { %v2711_v27 = vpop.permute.xlu0 %2710 }
 0x880   : > { %v2719_v50 = vsel %vm1255_vm5, %v4458_v59, %v2711_v27 }
 0x881   : > { %3932 = vmatprep.subr.mxu0 %v2719_v50  ;;  %v2709_v28 = vpop.permute.xlu1 %2708 }
 0x882   : > { %3933 = vmatpush3.msra.mxu0 %v2719_v50  ;;  %v2718_v29 = vsel %vm1255_vm5, %v4460_v61, %v2709_v28  ;;  %v2723_v61 = vld [vmem:[%s4250_s24 + $0x18] sm:$0xff] }
 0x883   : > { %v2707_v31 = vpop.permute.xlu0 %2706  ;;  %3934 = vmatprep.subr.mxu0 %v2718_v29 }
 0x884   : > { %3935 = vmatpush3.msra.mxu0 %v2718_v29  ;;  %v2717_v32 = vsel %vm1255_vm5, %v4454_v55, %v2707_v31 }
 0x885   : > { %3936 = vmatprep.subr.mxu0 %v2717_v32  ;;  %v2705_v33 = vpop.permute.xlu1 %2704 }
 0x886   : > { %3937 = vmatpush3.msra.mxu0 %v2717_v32  ;;  %v2716_v59 = vsel %vm1255_vm5, %v4456_v56, %v2705_v33 }
 0x887   : > { %3938 = vmatprep.subr.mxu0 %v2716_v59 }
 0x888   : > { %3939 = vmatpush3.msra.mxu0 %v2716_v59 }
 0x889   : > { %3941 = vmatmul.mubr.msk.f32.vlgmr.msra.gmra.mxu0 %vm892_vm3, %v2721_v34 }
 0x88a   : > { %3943 = vmatprep.mubr.msk.f32.mxu0 %vm892_vm3, %v2722_v36 }
 0x88d   : > { %3944 = vmatmul.mubr.msk.f32.gmra.mxu0 %vm892_vm3, %v2723_v61 }
 0x890   : > { %v2731_v38 = vpop.permute.xlu0 %2730 }
 0x892   : > { %v2736_v55 = vpop.permute.xlu1 %2735 }
 0x894   : > { %v2741_v44 = vpop.permute.xlu0 %2740 }
 0x896   : > { %v2746_v42 = vpop.permute.xlu1 %2745 }
 0x898   : > { %v2917_v50 = vpop.permute.xlu0 %2916 }
 0x89a   : > { %v2912_v28 = vpop.permute.xlu1 %2911 }
 0x89c   : > { %v2941_v29 = vpop.permute.xlu0 %2940 }
 0x89e   : > { %v2907_v31 = vpop.permute.xlu1 %2906 }
 0x8a0   : > { %v2936_v36 = vpop.permute.xlu0 %2935 }
 0x949   : > { %v3942_v39 = vpop.f32.mrf.mxu0 }
 0x94a   : > { %v2832_v40 = vadd.f32 %v3942_v39, %v2736_v55 }
 0x94b   : > { %v2826_v41 = vpop.f32.mrf.mxu0 }
 0x94c   : > { %v2827_v56 = vadd.f32 %v2826_v41, %v2731_v38  ;;  %v4539_v51 = vadd.f32 %v2832_v40, %v4310_v20  ;;  %v2902_v38 = vpop.permute.xlu1 %2901 }
 0x94d   : > { %v3945_v52 = vpop.f32.mrf.mxu0 }
 0x94e   : > { %v4542_v53 = vadd.f32 %v2827_v56, %v4308_v19  ;;  %v2842_v43 = vadd.f32 %v3945_v52, %v2746_v42  ;;  %v2858_v48 = vsel %vm796_vm2, %v4539_v51, 0.0  ;;  %v2931_v42 = vpop.permute.xlu0 %2930 }
 0x94f   : > { %v2836_v45 = vpop.f32.mrf.mxu0 }
 0x950   : > { %v2857_v46 = vsel %vm796_vm2, %v4542_v53, 0.0  ;;  %v2837_v47 = vadd.f32 %v2836_v45, %v2741_v44  ;;  %v4549_v49 = vadd.f32 %v2842_v43, %v4324_v30  ;;  %v2926_v43 = vpop.permute.xlu1 %2925  ;;  %v2948_v45 = vld [vmem:[%s4280_s13 + $0x8] sm:$0xff] }
 0x951   : > { %v2859_v20 = vadd.f32 %v2858_v48, %v2857_v46  ;;  %v2949_v46 = vld [vmem:[%s4280_s13 + $0x10] sm:$0xff]  ;;  %v2951_v48 = vld [vmem:[%s4280_s13 + $0x20] sm:$0xff] }
 0x952   : > { %v4552_v54 = vadd.f32 %v2837_v47, %v4318_v25  ;;  %v2862_v58 = vsel %vm796_vm2, %v4549_v49, 0.0  ;;  %v2950_v47 = vld [vmem:[%s4280_s13 + $0x18] sm:$0xff] }
 0x954   : > { %v2860_v19 = vsel %vm796_vm2, %v4552_v54, 0.0 }
 0x955   : > { %v2861_v57 = vadd.f32 %v2860_v19, %v2859_v20  ;;  %v2952_v20 = vld [vmem:[%s4280_s13 + $0x28] sm:$0xff]  ;;  %v2953_v19 = vld [vmem:[%s4280_s13 + $0x30] sm:$0xff] }
 0x957   : > { %v2863_v60 = vadd.f32 %v2862_v58, %v2861_v57  ;;  %v2954_v57 = vld [vmem:[%s4280_s13 + $0x38] sm:$0xff]  ;;  %v3204_v58 = vld [vmem:[%s4290_s2] sm:$0xff] }
 0x958   : > { %3982 = vmatprep.mubr.msk.f32.mxu0 %vm3232_vm6, %v3204_v58 }
 0x959   : > { %v2864_v35 = vrot.slane %v2863_v60, 4 }
 0x95b   : > { %v2865_v62 = vadd.f32 %v2864_v35, %v2863_v60  ;;  %v3001_v60 = vpop.permute.xlu0 %3000  ;;  %v2996_v35 = vpop.permute.xlu1 %2995 }
 0x95d   : > { %v2866_v63 = vrot.slane %v2865_v62, 2 }
 0x95f   : > { %v2867_v0 = vadd.f32 %v2866_v63, %v2865_v62  ;;  %v2991_v62 = vpop.permute.xlu0 %2990  ;;  %v2986_v63 = vpop.permute.xlu1 %2985 }
 0x961   : > { %v2868_v1 = vrot.slane %v2867_v0, 1 }
 0x963   : > { %v2869_v2 = vadd.f32 %v2868_v1, %v2867_v0  ;;  %v2981_v1 = vpop.permute.xlu0 %2980 }
 0x965   : > { %v2870_v30 = vmul.f32 0.03125, %v2869_v2 }
 0x967   : > { %v2871_v3 = vsub.f32 %v4542_v53, %v2870_v30  ;;  %v2872_v25 = vsub.f32 %v4539_v51, %v2870_v30  ;;  %v2873_v4 = vsub.f32 %v4552_v54, %v2870_v30  ;;  %v2874_v5 = vsub.f32 %v4549_v49, %v2870_v30  ;;  %v2976_v30 = vpop.permute.xlu1 %2975 }
 0x969   : > { %v2875_v6 = vmul.f32 %v2871_v3, %v2871_v3  ;;  %v2876_v7 = vmul.f32 %v2872_v25, %v2872_v25  ;;  %v2877_v8 = vmul.f32 %v2873_v4, %v2873_v4  ;;  %v2878_v11 = vmul.f32 %v2874_v5, %v2874_v5 }
 0x96b   : > { %v2879_v9 = vsel %vm796_vm2, %v2875_v6, 0.0  ;;  %v2880_v10 = vsel %vm796_vm2, %v2876_v7, 0.0  ;;  %v2882_v13 = vsel %vm796_vm2, %v2877_v8, 0.0  ;;  %v2884_v15 = vsel %vm796_vm2, %v2878_v11, 0.0  ;;  %v2971_v6 = vpop.permute.xlu0 %2970 }
 0x96c   : > { %v2881_v12 = vadd.f32 %v2880_v10, %v2879_v9  ;;  %v2966_v10 = vpop.permute.xlu1 %2965 }
 0x96e   : > { %v2883_v14 = vadd.f32 %v2882_v13, %v2881_v12 }
 0x970   : > { %v2885_v16 = vadd.f32 %v2884_v15, %v2883_v14 }
 0x972   : > { %v2886_v17 = vrot.slane %v2885_v16, 4 }
 0x974   : > { %v2887_v18 = vadd.f32 %v2886_v17, %v2885_v16 }
 0x976   : > { %v2888_v21 = vrot.slane %v2887_v18, 2 }
 0x978   : > { %v2889_v22 = vadd.f32 %v2888_v21, %v2887_v18 }
 0x97a   : > { %v2890_v23 = vrot.slane %v2889_v22, 1 }
 0x97c   : > { %v2891_v24 = vadd.f32 %v2890_v23, %v2889_v22 }
 0x97e   : > { %v2892_v26 = vmul.f32 0.03125, %v2891_v24 }
 0x980   : > { %v2893_v27 = vadd.f32 1e-05, %v2892_v26 }
 0x982   : > { %4065 = vrsqrt.f32 %v2893_v27 }
 0x98f   : > { %v4066_v32 = vpop.eup %4065 }
 0x990   : > { %v2898_v33 = vmul.f32 %v4066_v32, %v2874_v5  ;;  %v2897_v59 = vmul.f32 %v4066_v32, %v2873_v4  ;;  %v2896_v34 = vmul.f32 %v4066_v32, %v2872_v25  ;;  %v2895_v55 = vmul.f32 %v4066_v32, %v2871_v3 }
 0x992   : > { %v2922_v61 = vmul.f32 %v2917_v50, %v2898_v33  ;;  %v2921_v37 = vmul.f32 %v2912_v28, %v2897_v59  ;;  %v2920_v40 = vmul.f32 %v2907_v31, %v2896_v34  ;;  %v2919_v56 = vmul.f32 %v2902_v38, %v2895_v55 }
 0x994   : > { %v2946_v39 = vadd.f32 %v2941_v29, %v2922_v61  ;;  %v2945_v41 = vadd.f32 %v2936_v36, %v2921_v37  ;;  %v2944_v52 = vadd.f32 %v2931_v42, %v2920_v40  ;;  %v2943_v44 = vadd.f32 %v2926_v43, %v2919_v56 }
 0x996   : > { %3946 = vmatprep.subr.mxu1 %v2946_v39 }
 0x997   : > { %3947 = vmatpush3.msra.mxu1 %v2946_v39 }
 0x998   : > { %3948 = vmatprep.subr.mxu1 %v2945_v41 }
 0x999   : > { %3949 = vmatpush3.msra.mxu1 %v2945_v41 }
 0x99a   : > { %3950 = vmatprep.subr.mxu1 %v2944_v52 }
 0x99b   : > { %3951 = vmatpush3.msra.mxu1 %v2944_v52 }
 0x99c   : > { %3952 = vmatprep.subr.mxu1 %v2943_v44 }
 0x99d   : > { %3953 = vmatpush3.msra.mxu1 %v2943_v44 }
 0x99e   : > { %3955 = vmatmul.mubr.msk.f32.vlgmr.msra.gmra.mxu1 %vm892_vm3, %v2948_v45 }
 0x99f   : > { %3957 = vmatprep.mubr.msk.f32.mxu1 %vm892_vm3, %v2949_v46 }
 0x9a2   : > { %3958 = vmatmul.mubr.msk.f32.gmra.mxu1 %vm892_vm3, %v2950_v47 }
 0x9a3   : > { %3960 = vmatprep.mubr.msk.f32.mxu1 %vm892_vm3, %v2951_v48 }
 0x9a6   : > { %3961 = vmatmul.mubr.msk.f32.gmra.mxu1 %vm892_vm3, %v2952_v20 }
 0x9a7   : > { %3963 = vmatprep.mubr.msk.f32.mxu1 %vm892_vm3, %v2953_v19 }
 0x9aa   : > { %3964 = vmatmul.mubr.msk.f32.gmra.mxu1 %vm892_vm3, %v2954_v57 }
 0xa5e   : > { %v3956_v0 = vpop.f32.mrf.mxu1 }
 0xa5f   : > { %v4586_v8 = vadd.f32 %v3956_v0, %v2971_v6 }
 0xa60   : > { %v3093_v2 = vpop.f32.mrf.mxu1 }
 0xa61   : > { %v4592_v13 = vadd.f32 %v3093_v2, %v2966_v10  ;;  %v3141_v18 = vmul.f32 %v4586_v8, %v4586_v8 }
 0xa62   : > { %v3959_v3 = vpop.f32.mrf.mxu1 }
 0xa63   : > { %v4582_v25 = vadd.f32 %v3959_v3, %v2981_v1  ;;  %v3140_v27 = vmul.f32 %v4592_v13, %v4592_v13  ;;  %v3149_v33 = vmul.f32 %v3141_v18, %v4586_v8 }
 0xa64   : > { %v3103_v4 = vpop.f32.mrf.mxu1 }
 0xa65   : > { %v4584_v5 = vadd.f32 %v3103_v4, %v2976_v30  ;;  %v3143_v9 = vmul.f32 %v4582_v25, %v4582_v25  ;;  %v3148_v55 = vmul.f32 %v3140_v27, %v4592_v13  ;;  %v3157_v42 = vmul.f32 0.044715, %v3149_v33 }
 0xa66   : > { %v3962_v7 = vpop.f32.mrf.mxu1  ;;  %v3135_v27 = vmul.f32 0.5, %v4582_v25 }
 0xa67   : > { %v4590_v11 = vadd.f32 %v3962_v7, %v2991_v62  ;;  %v3142_v14 = vmul.f32 %v4584_v5, %v4584_v5  ;;  %v3151_v21 = vmul.f32 %v3143_v9, %v4582_v25  ;;  %v3156_v46 = vmul.f32 0.044715, %v3148_v55 }
 0xa68   : > { %v3113_v12 = vpop.f32.mrf.mxu1  ;;  %v3165_v19 = vadd.f32 %v3157_v42, %v4586_v8 }
 0xa69   : > { %v3145_v15 = vmul.f32 %v4590_v11, %v4590_v11  ;;  %v4598_v16 = vadd.f32 %v3113_v12, %v2986_v63  ;;  %v3150_v50 = vmul.f32 %v3142_v14, %v4584_v5  ;;  %v3159_v59 = vmul.f32 0.044715, %v3151_v21 }
 0xa6a   : > { %v3965_v17 = vpop.f32.mrf.mxu1  ;;  %v3173_v62 = vmul.f32 0.7978846, %v3165_v19 }
 0xa6b   : > { %v3129_v22 = vadd.f32 %v3965_v17, %v3001_v60  ;;  %v3153_v23 = vmul.f32 %v3145_v15, %v4590_v11  ;;  %v3144_v24 = vmul.f32 %v4598_v16, %v4598_v16  ;;  %v3158_v38 = vmul.f32 0.044715, %v3150_v50 }
 0xa6c   : > { %v3123_v26 = vpop.f32.mrf.mxu1  ;;  %v3167_v52 = vadd.f32 %v3159_v59, %v4582_v25  ;;  %v3164_v60 = vadd.f32 %v3156_v46, %v4592_v13  ;;  %v3137_v15 = vmul.f32 0.5, %v4590_v11  ;;  %v3132_v59 = vmul.f32 0.5, %v4592_v13 }
 0xa6d   : > { %v3147_v28 = vmul.f32 %v3129_v22, %v3129_v22  ;;  %v3124_v29 = vadd.f32 %v3123_v26, %v2996_v35  ;;  %v3161_v31 = vmul.f32 0.044715, %v3153_v23  ;;  %v3152_v32 = vmul.f32 %v3144_v24, %v4598_v16 }
 0xa6e   : > { %v3166_v47 = vadd.f32 %v3158_v38, %v4584_v5  ;;  %v3175_v57 = vmul.f32 0.7978846, %v3167_v52  ;;  %v3172_v63 = vmul.f32 0.7978846, %v3164_v60  ;;  %v3139_v30 = vmul.f32 0.5, %v3129_v22 }
 0xa6f   : > { %v3155_v34 = vmul.f32 %v3147_v28, %v3129_v22  ;;  %v3146_v36 = vmul.f32 %v3124_v29, %v3124_v29  ;;  %v3169_v61 = vadd.f32 %v3161_v31, %v4590_v11  ;;  %v3160_v37 = vmul.f32 0.044715, %v3152_v32 }
 0xa70   : > { %v3174_v35 = vmul.f32 0.7978846, %v3166_v47  ;;  %v3138_v7 = vmul.f32 0.5, %v3124_v29  ;;  %v3136_v23 = vmul.f32 0.5, %v4598_v16  ;;  %v3134_v11 = vmul.f32 0.5, %v4584_v5  ;;  %v3206_v5 = vld [vmem:[%s4290_s2 + $0x10] sm:$0xff] }
 0xa71   : > { %v3163_v39 = vmul.f32 0.044715, %v3155_v34  ;;  %v3154_v40 = vmul.f32 %v3146_v36, %v3124_v29  ;;  %v3177_v41 = vmul.f32 0.7978846, %v3169_v61  ;;  %v3168_v56 = vadd.f32 %v3160_v37, %v4598_v16  ;;  %v3205_v36 = vld [vmem:[%s4290_s2 + $0x8] sm:$0xff]  ;;  %v3220_v61 = vpop.permute.xlu1 %3219  ;;  %v3215_v37 = vpop.permute.xlu0 %3214 }
 0xa72   : > { %v3133_v32 = vmul.f32 0.5, %v4586_v8  ;;  %v3207_v8 = vld [vmem:[%s4290_s2 + $0x18] sm:$0xff] }
 0xa73   : > { %v3171_v43 = vadd.f32 %v3163_v39, %v3129_v22  ;;  %v3162_v44 = vmul.f32 0.044715, %v3154_v40  ;;  %v3176_v45 = vmul.f32 0.7978846, %v3168_v56  ;;  %4067 = vtanh.f32 %v3177_v41 }
 0xa75   : > { %v3179_v48 = vmul.f32 0.7978846, %v3171_v43  ;;  %v3170_v20 = vadd.f32 %v3162_v44, %v3124_v29  ;;  %v3230_v41 = vpop.permute.xlu1 %3229  ;;  %v3225_v43 = vpop.permute.xlu0 %3224 }
 0xa77   : > { %v3178_v58 = vmul.f32 0.7978846, %v3170_v20  ;;  %4069 = vtanh.f32 %v3179_v48 }
 0xa78   : > { %4071 = vtanh.f32 %v3176_v45 }
 0xa79   : > { %4073 = vtanh.f32 %v3178_v58 }
 0xa7a   : > { %4075 = vtanh.f32 %v3175_v57 }
 0xa7b   : > { %4077 = vtanh.f32 %v3174_v35 }
 0xa7c   : > { %4079 = vtanh.f32 %v3173_v62 }
 0xa7d   : > { %4081 = vtanh.f32 %v3172_v63 }
 0xa80   : > { %v4068_v0 = vpop.eup %4067 }
 0xa81   : > { %v3193_v10 = vadd.f32 1.0, %v4068_v0 }
 0xa83   : > { %v3201_v21 = vmul.f32 %v3193_v10, %v3137_v15 }
 0xa84   : > { %v4070_v1 = vpop.eup %4069 }
 0xa85   : > { %v4072_v2 = vpop.eup %4071  ;;  %v3195_v3 = vadd.f32 1.0, %v4070_v1 }
 0xa86   : > { %v4074_v4 = vpop.eup %4073  ;;  %v3192_v17 = vadd.f32 1.0, %v4072_v2 }
 0xa87   : > { %v3203_v6 = vmul.f32 %v3195_v3, %v3139_v30  ;;  %v3194_v9 = vadd.f32 1.0, %v4074_v4  ;;  %v4076_v12 = vpop.eup %4075 }
 0xa88   : > { %v4078_v18 = vpop.eup %4077  ;;  %v3191_v24 = vadd.f32 1.0, %v4076_v12  ;;  %v3200_v26 = vmul.f32 %v3192_v17, %v3136_v23 }
 0xa89   : > { %3966 = vmatprep.subr.mxu0 %v3203_v6  ;;  %v3202_v14 = vmul.f32 %v3194_v9, %v3138_v7  ;;  %v4080_v22 = vpop.eup %4079  ;;  %v3190_v50 = vadd.f32 1.0, %v4078_v18 }
 0xa8a   : > { %3967 = vmatpush3.msra.mxu0 %v3203_v6  ;;  %v4082_v28 = vpop.eup %4081  ;;  %v3199_v29 = vmul.f32 %v3191_v24, %v3135_v27  ;;  %v3189_v31 = vadd.f32 1.0, %v4080_v22 }
 0xa8b   : > { %3968 = vmatprep.subr.mxu0 %v3202_v14  ;;  %v3198_v16 = vmul.f32 %v3190_v50, %v3134_v11  ;;  %v3188_v33 = vadd.f32 1.0, %v4082_v28 }
 0xa8c   : > { %3969 = vmatpush3.msra.mxu0 %v3202_v14  ;;  %v3197_v25 = vmul.f32 %v3189_v31, %v3133_v32 }
 0xa8d   : > { %3970 = vmatprep.subr.mxu0 %v3201_v21  ;;  %v3196_v34 = vmul.f32 %v3188_v33, %v3132_v59 }
 0xa8e   : > { %3971 = vmatpush3.msra.mxu0 %v3201_v21 }
 0xa8f   : > { %3972 = vmatprep.subr.mxu0 %v3200_v26 }
 0xa90   : > { %3973 = vmatpush3.msra.mxu0 %v3200_v26 }
 0xa91   : > { %3974 = vmatprep.subr.mxu0 %v3199_v29 }
 0xa92   : > { %3975 = vmatpush3.msra.mxu0 %v3199_v29 }
 0xa93   : > { %3976 = vmatprep.subr.mxu0 %v3198_v16 }
 0xa94   : > { %3977 = vmatpush3.msra.mxu0 %v3198_v16 }
 0xa95   : > { %3978 = vmatprep.subr.mxu0 %v3197_v25 }
 0xa96   : > { %3979 = vmatpush3.msra.mxu0 %v3197_v25 }
 0xa97   : > { %3980 = vmatprep.subr.mxu0 %v3196_v34 }
 0xa98   : > { %3981 = vmatpush3.msra.mxu0 %v3196_v34 }
 0xa99   : > { %3983 = vmatmul.mubr.msk.f32.vlgmr.msra.gmra.mxu0 %vm3232_vm6, %v3205_v36 }
 0xa9a   : > { %3985 = vmatprep.mubr.msk.f32.mxu0 %vm3232_vm6, %v3206_v5 }
 0xa9d   : > { %3986 = vmatmul.mubr.msk.f32.gmra.mxu0 %vm3232_vm6, %v3207_v8 }
 0xb59   : > { %v3984_v55 = vpop.f32.mrf.mxu0 }
 0xb5a   : > { %v3317_v38 = vadd.f32 %v3984_v55, %v3220_v61 }
 0xb5b   : > { %v3311_v13 = vpop.f32.mrf.mxu0 }
 0xb5c   : > { %v3331_v39 = vadd.f32 %v3317_v38, %v4539_v51  ;;  %v3312_v40 = vadd.f32 %v3311_v13, %v3215_v37 }
 0xb5d   : > { %v3987_v56 = vpop.f32.mrf.mxu0 }
 0xb5e   : > { %3335 = vst.msk [vmem:[#allocation2 + $0x8] sm:$0xff] %vm796_vm2, %v3331_v39  ;;  %v3330_v42 = vadd.f32 %v3312_v40, %v4542_v53  ;;  %v3327_v52 = vadd.f32 %v3987_v56, %v3230_v41 }
 0xb5f   : > { %v3321_v44 = vpop.f32.mrf.mxu0 }
 0xb60   : > { %3334 = vst.msk [vmem:[#allocation2] sm:$0xff] %vm796_vm2, %v3330_v42  ;;  %v3333_v45 = vadd.f32 %v3327_v52, %v4549_v49  ;;  %v3322_v46 = vadd.f32 %v3321_v44, %v3225_v43  ;;  %3341 = sbr.rel (%p3717_p6) target bundleno = 3158 (0xc56), region = 80 }
 0xb62   : > { %3337 = vst.msk [vmem:[#allocation2 + $0x18] sm:$0xff] %vm796_vm2, %v3333_v45  ;;  %v3332_v47 = vadd.f32 %v3322_v46, %v4552_v54 }
 0xb64   : > { %3336 = vst.msk [vmem:[#allocation2 + $0x10] sm:$0xff] %vm796_vm2, %v3332_v47 }
 0xb65   : > { %3379 = vrot.lane.b32.xlu0 %v3330_v42, %s4141_s26  ;;  %3383 = vrot.lane.b32.xlu1 %v3332_v47, %s4141_s26 }
 0xb69   : > { %3381 = vrot.lane.b32.xlu0 %v3331_v39, %s4141_s26  ;;  %3385 = vrot.lane.b32.xlu1 %v3333_v45, %s4141_s26 }
 0xb87   : > { %3342 = vxpose.xlu0.b32.start [1/4] (short) (narrow) %v3330_v42, 8 }
 0xb8b   : > { %3343 = vxpose.xlu0.b32.cont [2/4] (short) (narrow) %v3331_v39, 8 }
 0xb8f   : > { %3344 = vxpose.xlu0.b32.cont [3/4] (short) (narrow) %v3332_v47, 8 }
 0xb93   : > { %3345 = vxpose.xlu0.b32.end [4/4] (short) (narrow) %v3333_v45, 8 }
 0xbd7   : > { %v3380_v51 = vpop.permute.xlu0 %3379  ;;  %v3384_v49 = vpop.permute.xlu1 %3383 }
 0xbd8   : > { %3391 = vxpose.xlu1.b32.start [1/4] (short) (narrow) %v3380_v51, 8 }
 0xbdb   : > { %v3382_v53 = vpop.permute.xlu0 %3381  ;;  %v3386_v54 = vpop.permute.xlu1 %3385 }
 0xbdc   : > { %3392 = vxpose.xlu1.b32.cont [2/4] (short) (narrow) %v3382_v53, 8 }
 0xbe0   : > { %3393 = vxpose.xlu1.b32.cont [3/4] (short) (narrow) %v3384_v49, 8 }
 0xbe4   : > { %3394 = vxpose.xlu1.b32.end [4/4] (short) (narrow) %v3386_v54, 8 }
 0xc03   : > { %v3358_v48 = vpop.trf.xlu0 }
 0xc04   : > { %3374 = vst.msk [vmem:[#allocation3] sm:$0xff] %vm892_vm3, %v3358_v48 }
 0xc54   : > { %v3407_v20 = vpop.trf.xlu1 }
 0xc55   : > { %3424 = vst.msk [vmem:[#allocation3 + $0x8] sm:$0xff] %vm892_vm3, %v3407_v20 }
 0xc56 PF: > { %s4700_s25 = sadd.s32 4294967295, %s4133_s27   ;;  %s4142_s21 = smov [#allocation3]  }
 0xc57   : > { %p4643_p7 = scmp.eq.s32.totalorder %s4700_s25, 1  ;;  %s3434_s24 = sshll.u32 %s4142_s21, 4  ;;  %s3435_s24 = int_to_ptr.vmem [resolvable:$true] %s3434_s24 }
 0xc58   : > { %s4083_s16 = scalar_lea.vmem %s3435_s24, 256  ;;  %p4090_p11 = scmp.lt.s32.totalorder %s3435_s24, %s3435_s24 }
 0xc59   : > { %p4084_p8 = scmp.ne.s32.totalorder %s3435_s24, %s4083_s16  ;;  %p4091_p12 = scmp.lt.s32.totalorder %s4083_s16, %s4083_s16 }
 0xc5b   : > { %p4085_p9 = pnand %p4084_p8, %p4643_p7  ;;  %p4092_p13 = por %p4091_p12, %p4090_p11 }
 0xc5d   : > { %p4086_p10 = pneg %p4085_p9 }
 0xc5f   : > { %p4093_p0 = pnand %p4092_p13, %p4086_p10 }
 0xc61   : > { %4096 = shalt.err (!%p4093_p0)
}
 0xc62   : > { %s4143_s19 = smov 128   ;;  %s4702_s29 = sld [smem:[#allocation15_spill]] }
 0xc68   : > { %3989 = dma.vmem_to_hbm [thread:$0]  (%p4643_p7), %s3435_s24, 256, %s4702_s29, [#allocation4], %s4143_s19, %s4143_s19, %s4140_s15  }
 0xc69   : > { %4120 = dma.done.wait (%p4643_p7), [#allocation4], 256  }
 0xc6a   : > { %4122 = vsyncadd (%p4643_p7), [#allocation4], 4294967040 }
 0xc6b PF: > { %s24_s27 = sadd.s32 1, %s4133_s27   ;;  %s4703_s25 = sld [smem:[#allocation6_spill]] }
 0xc6c   : > { %p21_p1 = scmp.ge.s32.totalorder %s24_s27, 4   ;;  %s4704_s26 = sld [smem:[#allocation7_spill]] }
 0xc6e   :  { %23 = sbr.rel (!%p21_p1) target bundleno = 11 (0xb), region = 146 }
 0xc73   :  { %3450 = vsyncpa [#allocation4], 1 }
 0xc74   :  { %3452 = vsyncpa [#allocation4 + $0x1], 1 }

</bundles_post_ra>
